<compile_context>
chip_gen: v5e
topology: v5e:2x2
jax: 0.10.0
libtpu: 0.0.40
codegen_flags: <defaults>
</compile_context>

<pallas_src>
import jax
import jax.numpy as jnp
from jax.experimental import pallas as pl
from jax.experimental.pallas import tpu as pltpu


def _round_up(x, m):
    return (x + m - 1) // m * m


def _pad_axis(a, axis, target):
    if a.shape[axis] == target:
        return a
    widths = [(0, 0)] * a.ndim
    widths[axis] = (0, target - a.shape[axis])
    return jnp.pad(a, widths)


def _pad_last(a, target):
    return _pad_axis(a, a.ndim - 1, target)


# -----------------------------------------------------------------------------
# Kernel factory.  grid = (N, nT): one batch element per n, TH image rows per
# spatial tile t.  Per tile (fully independent -> both axes "parallel"):
#   conv1(1x1)+BN1+ReLU over the tile rows AND a PADR-row halo above/below
#     (halo recompute), written bf16 into a small VMEM scratch whose guard rows
#     are zero at the image top/bottom;
#   conv2(3x3,pad=1) as im2col on 9 statically-offset slices of that scratch;
#   conv3(1x1)+BN3 + residual + ReLU  -> lane-dense bf16 output tile.
# -----------------------------------------------------------------------------
def _make_bottleneck_kernel(W, TW, PADR, Pp, Coutp, split_taps):

    def body(x_ref, w1_ref, w2_ref, w3_ref, b_ref, o_ref, t1_ref, cols_ref):
        t = pl.program_id(1)
        n_t = pl.num_programs(1)
        start = pl.multiple_of(t * TW, 8)

        b1 = b_ref[0:1, 0:Pp]            # packed shifts, f32
        b2 = b_ref[1:2, 0:Pp]
        b3 = b_ref[2:3, 0:Coutp]
        w1 = w1_ref[...]                 # (Cinp, Pp) bf16, BN scale pre-folded

        def conv1(rows_bf16):            # (R, Cinp) bf16 -> (R, Pp) bf16
            y = jnp.dot(rows_bf16, w1, preferred_element_type=jnp.float32)
            return jnp.maximum(y + b1, 0.0).astype(jnp.bfloat16)

        # ---- conv1 + BN1 + ReLU for this tile's rows.
        x_tile = x_ref[0, pl.ds(start, TW), :]                  # (TW, Cinp) bf16
        t1_ref[PADR:PADR + TW, :] = conv1(x_tile)

        # ---- top halo: PADR rows above the tile (zero guard at the image top).
        @pl.when(t == 0)
        def _():
            t1_ref[0:PADR, :] = jnp.zeros((PADR, Pp), jnp.bfloat16)

        @pl.when(t > 0)
        def _():
            hs = pl.multiple_of(start - PADR, 8)
            t1_ref[0:PADR, :] = conv1(x_ref[0, pl.ds(hs, PADR), :])

        # ---- bottom halo (zero guard at the image bottom).
        @pl.when(t == n_t - 1)
        def _():
            t1_ref[PADR + TW:2 * PADR + TW, :] = jnp.zeros((PADR, Pp), jnp.bfloat16)

        @pl.when(t < n_t - 1)
        def _():
            hs = pl.multiple_of(start + TW, 8)
            t1_ref[PADR + TW:2 * PADR + TW, :] = conv1(x_ref[0, pl.ds(hs, PADR), :])

        # ---- conv2 (3x3, pad=1) as im2col on the halo'd scratch.
        wcoord = jax.lax.broadcasted_iota(jnp.int32, (TW, 1), 0) % W
        ok_left = wcoord >= 1            # dw == -1 stays in-image
        ok_right = wcoord <= W - 2       # dw == +1 stays in-image

        def tap(k):                      # k = (dh+1)*3 + (dw+1) matches w2p row blocks
            dh, dw = k // 3 - 1, k % 3 - 1
            off = PADR + dh * W + dw
            v = t1_ref[off:off + TW, :]  # static slice, already bf16 (no cast)
            if dw == -1:
                v = jnp.where(ok_left, v, jnp.zeros((), jnp.bfloat16))
            elif dw == 1:
                v = jnp.where(ok_right, v, jnp.zeros((), jnp.bfloat16))
            return v

        if split_taps:
            # v5e (128-deep MXU): 9 accumulating K=Pp matmuls, no cols staging.
            y2 = jnp.zeros((TW, Pp), jnp.float32)
            for k in range(9):
                y2 = y2 + jnp.dot(tap(k), w2_ref[k * Pp:(k + 1) * Pp, :],
                                  preferred_element_type=jnp.float32)
        else:
            # v6e/v7x (256-deep MXU): stage taps into a persistent bf16 scratch,
            # one long-K matmul (K = 9*Pp).
            for k in range(9):
                cols_ref[:, k * Pp:(k + 1) * Pp] = tap(k)
            y2 = jnp.dot(cols_ref[...], w2_ref[...],
                         preferred_element_type=jnp.float32)

        t2 = jnp.maximum(y2 + b2, 0.0).astype(jnp.bfloat16)      # (TW, Pp)

        # ---- conv3 (1x1) + BN3 + residual + ReLU (add in f32, store bf16).
        y3 = jnp.dot(t2, w3_ref[...], preferred_element_type=jnp.float32)
        res = x_tile.astype(jnp.float32)                          # residual in f32
        o_ref[0] = jnp.maximum(y3 + b3 + res, 0.0).astype(o_ref.dtype)

    if split_taps:
        def kernel(x_ref, w1_ref, w2_ref, w3_ref, b_ref, o_ref, t1_ref):
            body(x_ref, w1_ref, w2_ref, w3_ref, b_ref, o_ref, t1_ref, None)
    else:
        def kernel(x_ref, w1_ref, w2_ref, w3_ref, b_ref, o_ref, t1_ref, cols_ref):
            body(x_ref, w1_ref, w2_ref, w3_ref, b_ref, o_ref, t1_ref, cols_ref)
    return kernel


# -----------------------------------------------------------------------------
# One-time parameter prep (model init): fold BN scales into the conv weights in
# f32, pad channels to 128 lanes, cast to bf16, pack the shifts into one array.
# -----------------------------------------------------------------------------
def prepare_bottleneck_params(w1, w2_3x3, w3, conv1_b, conv2_b, conv3_b,
                              bn1, bn2, bn3, eps=1e-3):
    Cin, P = w1.shape
    Cout = w3.shape[1]
    LANE = 128
    Cinp = _round_up(Cin, LANE)
    Pp = _round_up(P, LANE)
    Coutp = _round_up(Cout, LANE)

    def fold(bn, cb):
        g, b, m, v = bn
        s = g / jnp.sqrt(v + eps)
        return s, b + s * (cb - m)

    s1, sh1 = fold(bn1, conv1_b)
    s2, sh2 = fold(bn2, conv2_b)
    s3, sh3 = fold(bn3, conv3_b)

    # Fold BN scales into the weights column-wise (f32) before padding / bf16.
    w1e = w1 * s1[None, :]
    w2e = w2_3x3 * s2[None, None, None, :]
    w3e = w3 * s3[None, :]

    w1p = _pad_last(_pad_axis(w1e, 0, Cinp), Pp).astype(jnp.bfloat16)        # (Cinp, Pp)
    w2p = _pad_last(_pad_axis(w2e, 2, Pp), Pp)                                # (3,3,Pp,Pp)
    w2p = w2p.reshape(9 * Pp, Pp).astype(jnp.bfloat16)                        # rows [k*Pp:(k+1)*Pp] = tap k
    w3p = _pad_last(_pad_axis(w3e, 0, Pp), Coutp).astype(jnp.bfloat16)        # (Pp, Coutp)

    Cmax = max(Pp, Coutp)
    bmat = jnp.zeros((3, Cmax), jnp.float32)
    bmat = bmat.at[0, :P].set(sh1)
    bmat = bmat.at[1, :P].set(sh2)
    bmat = bmat.at[2, :Cout].set(sh3)

    return dict(w1p=w1p, w2p=w2p, w3p=w3p, bmat=bmat, cin=Cin, cout=Cout)


# -----------------------------------------------------------------------------
# Wrapper: NHWC bf16 in / NHWC bf16 out, lane-dense padded channels.
# -----------------------------------------------------------------------------
def bottleneck_pallas(x_nhwc, params, *, tile_rows=None, max_tile_elems=1024,
                      split_taps=False):
    N, H, W, Cin = x_nhwc.shape
    w1p, w2p, w3p, bmat = params["w1p"], params["w2p"], params["w3p"], params["bmat"]
    Cinp, Pp = w1p.shape
    Coutp = w3p.shape[1]
    Cout = params["cout"]
    M = H * W
    assert Cin == params["cin"]
    assert Cout == Cin, "downsample is None / stride=1 => inplanes == planes*4"

    # Halo size (>= W+1 rows for the 3x3 taps), 16-aligned for bf16 sublane tiles.
    PADR = _round_up(W + 1, 16)

    # Spatial tile: TH image rows per grid step.
    if tile_rows is None:
        tile_rows = H
        for th in range(H, 0, -1):
            tw = th * W
            if (H % th == 0 and tw <= max_tile_elems and tw % 16 == 0
                    and (H // th == 1 or tw >= PADR)):
                tile_rows = th
                break
    TH = tile_rows
    assert H % TH == 0, "TODO(synk): ragged spatial tiling not implemented"
    nT = H // TH
    TW = TH * W
    assert TW % 8 == 0, "tile_rows * W must be a multiple of 8"
    assert nT == 1 or TW >= PADR, "tile too small for the conv1 halo recompute"

    # Activations: bf16, NHWC flattened, channels zero-padded to 128 lanes.
    # (For real ResNet channel counts the pad is a no-op.)
    x2d = _pad_last(x_nhwc.astype(jnp.bfloat16).reshape(N, M, Cin), Cinp)

    Cmax = bmat.shape[1]
    kernel = _make_bottleneck_kernel(W, TW, PADR, Pp, Coutp, split_taps)

    scratch = [pltpu.VMEM((TW + 2 * PADR, Pp), jnp.bfloat16)]       # t1 halo scratch
    if not split_taps:
        scratch.append(pltpu.VMEM((TW, 9 * Pp), jnp.bfloat16))      # im2col cols

    # VMEM budget from actual buffer sizes (double-buffer factor 2), clamped so
    # it also fits v7x's 64 MiB per-TensorCore VMEM.
    need = (2 * (M * Cinp * 2)                                       # x block (bf16)
            + 2 * (TW * Coutp * 2)                                   # out tile (bf16)
            + 2 * 2 * (Cinp * Pp + 9 * Pp * Pp + Pp * Coutp)         # weights (bf16)
            + 2 * (3 * Cmax * 4)                                     # shifts (f32)
            + (TW + 2 * PADR) * Pp * 2                               # t1 scratch
            + (0 if split_taps else TW * 9 * Pp * 2)                 # cols scratch
            + TW * (9 * Pp + 2 * Pp + 2 * Coutp) * 4                 # f32 temporaries
            + (4 << 20))                                             # slack
    vmem_limit = int(min(64 << 20, max(need, 16 << 20)))

    out2d = pl.pallas_call(
        kernel,
        out_shape=jax.ShapeDtypeStruct((N, M, Coutp), jnp.bfloat16),
        grid=(N, nT),
        in_specs=[
            # x: full image per batch element; constant index map over t keeps
            # the block VMEM-resident across spatial tiles of the same n.
            pl.BlockSpec((1, M, Cinp), lambda n, t: (n, 0, 0)),
            # weights / packed shifts: constant index maps -> fetched once.
            pl.BlockSpec((Cinp, Pp), lambda n, t: (0, 0)),
            pl.BlockSpec((9 * Pp, Pp), lambda n, t: (0, 0)),
            pl.BlockSpec((Pp, Coutp), lambda n, t: (0, 0)),
            pl.BlockSpec((3, Cmax), lambda n, t: (0, 0)),
        ],
        out_specs=pl.BlockSpec((1, TW, Coutp), lambda n, t: (n, t, 0)),
        scratch_shapes=scratch,
        compiler_params=pltpu.CompilerParams(
            dimension_semantics=("parallel", "parallel"),
            vmem_limit_bytes=vmem_limit),
    )(x2d, w1p, w2p, w3p, bmat)

    return out2d[:, :, :Cout].reshape(N, H, W, Cout)


# -----------------------------------------------------------------------------
# Plain-JAX NHWC reference.  matmul_dtype=jnp.bfloat16 reproduces the kernel's
# operand rounding (f32 accumulation either way).
# -----------------------------------------------------------------------------
def bottleneck_ref(x_nhwc, w1, w2_3x3, w3, conv1_b, conv2_b, conv3_b,
                   bn1, bn2, bn3, eps=1e-3, matmul_dtype=jnp.float32):
    H, W = x_nhwc.shape[1:3]
    hi = jax.lax.Precision.HIGHEST

    def fold(bn, cb):
        g, b, m, v = bn
        s = g / jnp.sqrt(v + eps)
        return s, b + s * (cb - m)

    s1, sh1 = fold(bn1, conv1_b)
    s2, sh2 = fold(bn2, conv2_b)
    s3, sh3 = fold(bn3, conv3_b)

    def q(a):
        return a.astype(matmul_dtype).astype(jnp.float32)

    def mm(a, w):
        return jnp.einsum('nhwc,cp->nhwp', q(a), q(w), precision=hi)

    x = q(x_nhwc)
    t1 = jnp.maximum(mm(x, w1 * s1[None, :]) + sh1, 0.0)
    tp = jnp.pad(t1, ((0, 0), (1, 1), (1, 1), (0, 0)))
    acc = jnp.zeros(t1.shape[:-1] + (w2_3x3.shape[-1],), jnp.float32)
    for u in range(3):
        for v in range(3):
            acc = acc + mm(tp[:, u:u + H, v:v + W, :], w2_3x3[u, v] * s2[None, :])
    t2 = jnp.maximum(acc + sh2, 0.0)
    out = mm(t2, w3 * s3[None, :]) + sh3 + x
    return jnp.maximum(out, 0.0)


if __name__ == "__main__":
    # Shapes implied by the module: downsample=None, stride=1 => inplanes == planes*4.
    planes = 4
    inplanes = planes * 4        # 16
    cout = planes * 4            # 16
    N, H, W = 2, 16, 16

    key = jax.random.PRNGKey(0)
    ks = jax.random.split(key, 20)

    # NHWC activations (the surrounding model stays NHWC; no standalone
    # NCHW<->NHWC transposes around the kernel).
    x = jax.random.normal(ks[0], (N, H, W, inplanes), jnp.float32)

    # PyTorch-shaped conv weights (OIHW), deterministic synthetic init.
    conv1_w = 0.1 * jax.random.normal(ks[1], (planes, inplanes, 1, 1), jnp.float32)
    conv1_b = 0.1 * jax.random.normal(ks[2], (planes,), jnp.float32)
    conv2_w = 0.1 * jax.random.normal(ks[3], (planes, planes, 3, 3), jnp.float32)
    conv2_b = 0.1 * jax.random.normal(ks[4], (planes,), jnp.float32)
    conv3_w = 0.1 * jax.random.normal(ks[5], (cout, planes, 1, 1), jnp.float32)
    conv3_b = 0.1 * jax.random.normal(ks[6], (cout,), jnp.float32)

    def bn_params(kg, kb, km, kv, c):
        gamma = 0.75 + 0.5 * jax.random.uniform(kg, (c,), jnp.float32)
        beta = 0.1 * jax.random.normal(kb, (c,), jnp.float32)
        mean = 0.1 * jax.random.normal(km, (c,), jnp.float32)
        var = 0.75 + 0.5 * jax.random.uniform(kv, (c,), jnp.float32)
        return gamma, beta, mean, var

    bn1 = bn_params(ks[7], ks[8], ks[9], ks[10], planes)
    bn2 = bn_params(ks[11], ks[12], ks[13], ks[14], planes)
    bn3 = bn_params(ks[15], ks[16], ks[17], ks[18], cout)

    # Re-layout weights to channels-last matmul form.
    w1 = conv1_w[:, :, 0, 0].T                      # (Cin, P)
    w2_3x3 = jnp.transpose(conv2_w, (2, 3, 1, 0))   # (3,3,P_in,P_out)
    w3 = conv3_w[:, :, 0, 0].T                      # (P, Cout)

    # One-time weight prep (BN-folded, padded, bf16) — amortized at model init.
    params = prepare_bottleneck_params(w1, w2_3x3, w3, conv1_b, conv2_b, conv3_b,
                                       bn1, bn2, bn3)

    ref_bf16 = bottleneck_ref(x, w1, w2_3x3, w3, conv1_b, conv2_b, conv3_b,
                              bn1, bn2, bn3, matmul_dtype=jnp.bfloat16)
    ref_f32 = bottleneck_ref(x, w1, w2_3x3, w3, conv1_b, conv2_b, conv3_b,
                             bn1, bn2, bn3)

    x_bf16 = x.astype(jnp.bfloat16)   # activations flow in bf16

    # (tile_rows, split_taps): multi-tile + single long-K matmul (v6e/v7x path),
    # multi-tile + 9 accumulating matmuls (v5e path), and the single-tile edge case.
    for tile_rows, split in ((4, False), (4, True), (None, False)):
        out = bottleneck_pallas(x_bf16, params, tile_rows=tile_rows,
                                split_taps=split)
        out = jax.block_until_ready(out)
        assert out.shape == (N, H, W, cout)
        o32 = out.astype(jnp.float32)

        # Tight check vs reference with the same bf16 operand rounding.
        err = float(jnp.max(jnp.abs(o32 - ref_bf16)))
        assert jnp.allclose(o32, ref_bf16, atol=3e-2, rtol=3e-2), (tile_rows, split, err)

        # Sanity check vs the pure-f32 reference (bf16 I/O + operands cost a
        # little precision; accumulation / elementwise math is f32 in-kernel).
        err32 = float(jnp.max(jnp.abs(o32 - ref_f32)))
        assert jnp.allclose(o32, ref_f32, atol=1e-1, rtol=1e-1), (tile_rows, split, err32)

    print("KERNEL_OK")
</pallas_src>

<mosaic_0001>
module attributes {stable_mosaic.version = 11 : i64} {
  func.func @kernel(%arg0: i32, %arg1: i32, %arg2: memref<1x256x128xbf16, #tpu.memory_space<vmem>>, %arg3: memref<128x128xbf16, #tpu.memory_space<vmem>>, %arg4: memref<1152x128xbf16, #tpu.memory_space<vmem>>, %arg5: memref<128x128xbf16, #tpu.memory_space<vmem>>, %arg6: memref<3x128xf32, #tpu.memory_space<vmem>>, %arg7: memref<1x64x128xbf16, #tpu.memory_space<vmem>>, %arg8: memref<128x128xbf16, #tpu.memory_space<vmem>>, %arg9: memref<64x1152xbf16, #tpu.memory_space<vmem>>) attributes {dimension_semantics = [#tpu.dimension_semantics<parallel>, #tpu.dimension_semantics<parallel>], iteration_bounds = array<i64: 2, 4>, scalar_prefetch = 0 : i64, scratch_operands = 2 : i64, tpu.core_type = #tpu.core_type<tc>, window_params = [{transform_indices = @transform_0, window_bounds = array<i64: 1, 256, 128>}, {pipeline_mode = #tpu.pipeline_mode<synchronous>, transform_indices = @transform_1, window_bounds = array<i64: 128, 128>}, {pipeline_mode = #tpu.pipeline_mode<synchronous>, transform_indices = @transform_2, window_bounds = array<i64: 1152, 128>}, {pipeline_mode = #tpu.pipeline_mode<synchronous>, transform_indices = @transform_3, window_bounds = array<i64: 128, 128>}, {pipeline_mode = #tpu.pipeline_mode<synchronous>, transform_indices = @transform_4, window_bounds = array<i64: 3, 128>}, {transform_indices = @transform_5, window_bounds = array<i64: 1, 64, 128>}]} {
    %c64_i32 = arith.constant 64 : i32
    %0 = arith.muli %arg1, %c64_i32 : i32
    %1 = tpu.assume_multiple %0, 8 : i32
    %c0 = arith.constant 0 : index
    %c0_0 = arith.constant 0 : index
    %2 = vector.load %arg6[%c0, %c0_0] : memref<3x128xf32, #tpu.memory_space<vmem>>, vector<1x128xf32>
    %c1 = arith.constant 1 : index
    %c0_1 = arith.constant 0 : index
    %3 = vector.load %arg6[%c1, %c0_1] : memref<3x128xf32, #tpu.memory_space<vmem>>, vector<1x128xf32>
    %c2 = arith.constant 2 : index
    %c0_2 = arith.constant 0 : index
    %4 = vector.load %arg6[%c2, %c0_2] : memref<3x128xf32, #tpu.memory_space<vmem>>, vector<1x128xf32>
    %c0_3 = arith.constant 0 : index
    %c0_4 = arith.constant 0 : index
    %5 = vector.load %arg3[%c0_3, %c0_4] : memref<128x128xbf16, #tpu.memory_space<vmem>>, vector<128x128xbf16>
    %c0_5 = arith.constant 0 : index
    %6 = arith.index_cast %1 : i32 to index
    %c0_6 = arith.constant 0 : index
    %7 = vector.load %arg2[%c0_5, %6, %c0_6] : memref<1x256x128xbf16, #tpu.memory_space<vmem>>, vector<1x64x128xbf16>
    %8 = vector.shape_cast %7 : vector<1x64x128xbf16> to vector<64x128xbf16>
    %cst = arith.constant dense<0.000000e+00> : vector<64x128xf32>
    %9 = tpu.matmul %8, %5, %cst {dimension_numbers = #tpu.dot_dimension_numbers<[1], [0], [0], [1], [0, 0, 1, 1], [], []>} : vector<64x128xbf16>, vector<128x128xbf16>, vector<64x128xf32> -> vector<64x128xf32>
    %10 = vector.broadcast %2 : vector<1x128xf32> to vector<64x128xf32>
    %11 = arith.addf %9, %10 : vector<64x128xf32>
    %cst_7 = arith.constant 0.000000e+00 : f32
    %12 = vector.broadcast %cst_7 : f32 to vector<64x128xf32>
    %13 = arith.maximumf %11, %12 : vector<64x128xf32>
    %14 = arith.truncf %13 : vector<64x128xf32> to vector<64x128xbf16>
    %c32 = arith.constant 32 : index
    %c0_8 = arith.constant 0 : index
    %15 = vector.load %arg8[%c32, %c0_8] : memref<128x128xbf16, #tpu.memory_space<vmem>>, vector<64x128xbf16>
    tpu.vector_store %arg8[%c32, %c0_8], %14 {strides = array<i32>} : memref<128x128xbf16, #tpu.memory_space<vmem>>, vector<64x128xbf16>,
    %c0_i32 = arith.constant 0 : i32
    %16 = arith.cmpi eq, %arg1, %c0_i32 : i32
    %17 = arith.extui %16 : i1 to i32
    %c0_i32_9 = arith.constant 0 : i32
    %18 = arith.cmpi ne, %17, %c0_i32_9 : i32
    scf.if %18 {
      %cst_59 = arith.constant 0.000000e+00 : bf16
      %111 = vector.broadcast %cst_59 : bf16 to vector<32x128xbf16>
      %c0_60 = arith.constant 0 : index
      %c0_61 = arith.constant 0 : index
      %112 = vector.load %arg8[%c0_60, %c0_61] : memref<128x128xbf16, #tpu.memory_space<vmem>>, vector<32x128xbf16>
      tpu.vector_store %arg8[%c0_60, %c0_61], %111 {strides = array<i32>} : memref<128x128xbf16, #tpu.memory_space<vmem>>, vector<32x128xbf16>,
    } else {
    }
    %c0_i32_10 = arith.constant 0 : i32
    %19 = arith.cmpi sgt, %arg1, %c0_i32_10 : i32
    %20 = arith.extui %19 : i1 to i32
    %c0_i32_11 = arith.constant 0 : i32
    %21 = arith.cmpi ne, %20, %c0_i32_11 : i32
    scf.if %21 {
      %c32_i32 = arith.constant 32 : i32
      %111 = arith.subi %1, %c32_i32 : i32
      %112 = tpu.assume_multiple %111, 8 : i32
      %c0_59 = arith.constant 0 : index
      %113 = arith.index_cast %112 : i32 to index
      %c0_60 = arith.constant 0 : index
      %114 = vector.load %arg2[%c0_59, %113, %c0_60] : memref<1x256x128xbf16, #tpu.memory_space<vmem>>, vector<1x32x128xbf16>
      %115 = vector.shape_cast %114 : vector<1x32x128xbf16> to vector<32x128xbf16>
      %cst_61 = arith.constant dense<0.000000e+00> : vector<32x128xf32>
      %116 = tpu.matmul %115, %5, %cst_61 {dimension_numbers = #tpu.dot_dimension_numbers<[1], [0], [0], [1], [0, 0, 1, 1], [], []>} : vector<32x128xbf16>, vector<128x128xbf16>, vector<32x128xf32> -> vector<32x128xf32>
      %117 = vector.broadcast %2 : vector<1x128xf32> to vector<32x128xf32>
      %118 = arith.addf %116, %117 : vector<32x128xf32>
      %cst_62 = arith.constant 0.000000e+00 : f32
      %119 = vector.broadcast %cst_62 : f32 to vector<32x128xf32>
      %120 = arith.maximumf %118, %119 : vector<32x128xf32>
      %121 = arith.truncf %120 : vector<32x128xf32> to vector<32x128xbf16>
      %c0_63 = arith.constant 0 : index
      %c0_64 = arith.constant 0 : index
      %122 = vector.load %arg8[%c0_63, %c0_64] : memref<128x128xbf16, #tpu.memory_space<vmem>>, vector<32x128xbf16>
      tpu.vector_store %arg8[%c0_63, %c0_64], %121 {strides = array<i32>} : memref<128x128xbf16, #tpu.memory_space<vmem>>, vector<32x128xbf16>,
    } else {
    }
    %c3_i32 = arith.constant 3 : i32
    %22 = arith.cmpi eq, %arg1, %c3_i32 : i32
    %23 = arith.extui %22 : i1 to i32
    %c0_i32_12 = arith.constant 0 : i32
    %24 = arith.cmpi ne, %23, %c0_i32_12 : i32
    scf.if %24 {
      %cst_59 = arith.constant 0.000000e+00 : bf16
      %111 = vector.broadcast %cst_59 : bf16 to vector<32x128xbf16>
      %c96 = arith.constant 96 : index
      %c0_60 = arith.constant 0 : index
      %112 = vector.load %arg8[%c96, %c0_60] : memref<128x128xbf16, #tpu.memory_space<vmem>>, vector<32x128xbf16>
      tpu.vector_store %arg8[%c96, %c0_60], %111 {strides = array<i32>} : memref<128x128xbf16, #tpu.memory_space<vmem>>, vector<32x128xbf16>,
    } else {
    }
    %c3_i32_13 = arith.constant 3 : i32
    %25 = arith.cmpi slt, %arg1, %c3_i32_13 : i32
    %26 = arith.extui %25 : i1 to i32
    %c0_i32_14 = arith.constant 0 : i32
    %27 = arith.cmpi ne, %26, %c0_i32_14 : i32
    scf.if %27 {
      %c64_i32_59 = arith.constant 64 : i32
      %111 = arith.addi %1, %c64_i32_59 : i32
      %112 = tpu.assume_multiple %111, 8 : i32
      %c0_60 = arith.constant 0 : index
      %113 = arith.index_cast %112 : i32 to index
      %c0_61 = arith.constant 0 : index
      %114 = vector.load %arg2[%c0_60, %113, %c0_61] : memref<1x256x128xbf16, #tpu.memory_space<vmem>>, vector<1x32x128xbf16>
      %115 = vector.shape_cast %114 : vector<1x32x128xbf16> to vector<32x128xbf16>
      %cst_62 = arith.constant dense<0.000000e+00> : vector<32x128xf32>
      %116 = tpu.matmul %115, %5, %cst_62 {dimension_numbers = #tpu.dot_dimension_numbers<[1], [0], [0], [1], [0, 0, 1, 1], [], []>} : vector<32x128xbf16>, vector<128x128xbf16>, vector<32x128xf32> -> vector<32x128xf32>
      %117 = vector.broadcast %2 : vector<1x128xf32> to vector<32x128xf32>
      %118 = arith.addf %116, %117 : vector<32x128xf32>
      %cst_63 = arith.constant 0.000000e+00 : f32
      %119 = vector.broadcast %cst_63 : f32 to vector<32x128xf32>
      %120 = arith.maximumf %118, %119 : vector<32x128xf32>
      %121 = arith.truncf %120 : vector<32x128xf32> to vector<32x128xbf16>
      %c96 = arith.constant 96 : index
      %c0_64 = arith.constant 0 : index
      %122 = vector.load %arg8[%c96, %c0_64] : memref<128x128xbf16, #tpu.memory_space<vmem>>, vector<32x128xbf16>
      tpu.vector_store %arg8[%c96, %c0_64], %121 {strides = array<i32>} : memref<128x128xbf16, #tpu.memory_space<vmem>>, vector<32x128xbf16>,
    } else {
    }
    %28 = tpu.iota {dimensions = array<i32: 0>} : vector<64x1xi32>
    %c16_i32 = arith.constant 16 : i32
    %c0_i32_15 = arith.constant 0 : i32
    %29 = arith.cmpi eq, %c16_i32, %c0_i32_15 : i32
    %c1_i32 = arith.constant 1 : i32
    %30 = arith.select %29, %c1_i32, %c16_i32 : i32
    %31 = vector.broadcast %30 : i32 to vector<64x1xi32>
    %32 = arith.remsi %28, %31 : vector<64x1xi32>
    %c0_i32_16 = arith.constant 0 : i32
    %33 = vector.broadcast %c0_i32_16 : i32 to vector<64x1xi32>
    %34 = arith.cmpi ne, %32, %33 : vector<64x1xi32>
    %c0_i32_17 = arith.constant 0 : i32
    %35 = vector.broadcast %c0_i32_17 : i32 to vector<64x1xi32>
    %36 = arith.cmpi slt, %32, %35 : vector<64x1xi32>
    %c0_i32_18 = arith.constant 0 : i32
    %37 = arith.cmpi slt, %30, %c0_i32_18 : i32
    %38 = vector.broadcast %37 : i1 to vector<64x1xi1>
    %39 = vector.broadcast %38 : vector<64x1xi1> to vector<64x1xi1>
    %40 = arith.xori %36, %39 : vector<64x1xi1>
    %41 = arith.andi %40, %34 : vector<64x1xi1>
    %42 = vector.broadcast %30 : i32 to vector<64x1xi32>
    %43 = arith.addi %32, %42 : vector<64x1xi32>
    %44 = arith.select %41, %43, %32 : vector<64x1xi1>, vector<64x1xi32>
    %c1_i32_19 = arith.constant 1 : i32
    %45 = vector.broadcast %c1_i32_19 : i32 to vector<64x1xi32>
    %46 = arith.cmpi sge, %44, %45 : vector<64x1xi32>
    %c14_i32 = arith.constant 14 : i32
    %47 = vector.broadcast %c14_i32 : i32 to vector<64x1xi32>
    %48 = arith.cmpi sle, %44, %47 : vector<64x1xi32>
    %c15 = arith.constant 15 : index
    %c0_20 = arith.constant 0 : index
    %49 = vector.load %arg8[%c15, %c0_20] : memref<128x128xbf16, #tpu.memory_space<vmem>>, vector<64x128xbf16>
    %cst_21 = arith.constant 0.000000e+00 : bf16
    %50 = vector.shape_cast %46 : vector<64x1xi1> to vector<64x1xi1>
    %51 = vector.broadcast %50 : vector<64x1xi1> to vector<64x128xi1>
    %52 = vector.broadcast %cst_21 : bf16 to vector<64x128xbf16>
    %53 = arith.select %51, %49, %52 : vector<64x128xi1>, vector<64x128xbf16>
    %c0_22 = arith.constant 0 : index
    %c0_23 = arith.constant 0 : index
    %54 = vector.load %arg9[%c0_22, %c0_23] : memref<64x1152xbf16, #tpu.memory_space<vmem>>, vector<64x128xbf16>
    tpu.vector_store %arg9[%c0_22, %c0_23], %53 {strides = array<i32>} : memref<64x1152xbf16, #tpu.memory_space<vmem>>, vector<64x128xbf16>,
    %c16 = arith.constant 16 : index
    %c0_24 = arith.constant 0 : index
    %55 = vector.load %arg8[%c16, %c0_24] : memref<128x128xbf16, #tpu.memory_space<vmem>>, vector<64x128xbf16>
    %c0_25 = arith.constant 0 : index
    %c128 = arith.constant 128 : index
    %56 = vector.load %arg9[%c0_25, %c128] : memref<64x1152xbf16, #tpu.memory_space<vmem>>, vector<64x128xbf16>
    tpu.vector_store %arg9[%c0_25, %c128], %55 {strides = array<i32>} : memref<64x1152xbf16, #tpu.memory_space<vmem>>, vector<64x128xbf16>,
    %c17 = arith.constant 17 : index
    %c0_26 = arith.constant 0 : index
    %57 = vector.load %arg8[%c17, %c0_26] : memref<128x128xbf16, #tpu.memory_space<vmem>>, vector<64x128xbf16>
    %cst_27 = arith.constant 0.000000e+00 : bf16
    %58 = vector.shape_cast %48 : vector<64x1xi1> to vector<64x1xi1>
    %59 = vector.broadcast %58 : vector<64x1xi1> to vector<64x128xi1>
    %60 = vector.broadcast %cst_27 : bf16 to vector<64x128xbf16>
    %61 = arith.select %59, %57, %60 : vector<64x128xi1>, vector<64x128xbf16>
    %c0_28 = arith.constant 0 : index
    %c256 = arith.constant 256 : index
    %62 = vector.load %arg9[%c0_28, %c256] : memref<64x1152xbf16, #tpu.memory_space<vmem>>, vector<64x128xbf16>
    tpu.vector_store %arg9[%c0_28, %c256], %61 {strides = array<i32>} : memref<64x1152xbf16, #tpu.memory_space<vmem>>, vector<64x128xbf16>,
    %c31 = arith.constant 31 : index
    %c0_29 = arith.constant 0 : index
    %63 = vector.load %arg8[%c31, %c0_29] : memref<128x128xbf16, #tpu.memory_space<vmem>>, vector<64x128xbf16>
    %cst_30 = arith.constant 0.000000e+00 : bf16
    %64 = vector.shape_cast %46 : vector<64x1xi1> to vector<64x1xi1>
    %65 = vector.broadcast %64 : vector<64x1xi1> to vector<64x128xi1>
    %66 = vector.broadcast %cst_30 : bf16 to vector<64x128xbf16>
    %67 = arith.select %65, %63, %66 : vector<64x128xi1>, vector<64x128xbf16>
    %c0_31 = arith.constant 0 : index
    %c384 = arith.constant 384 : index
    %68 = vector.load %arg9[%c0_31, %c384] : memref<64x1152xbf16, #tpu.memory_space<vmem>>, vector<64x128xbf16>
    tpu.vector_store %arg9[%c0_31, %c384], %67 {strides = array<i32>} : memref<64x1152xbf16, #tpu.memory_space<vmem>>, vector<64x128xbf16>,
    %c32_32 = arith.constant 32 : index
    %c0_33 = arith.constant 0 : index
    %69 = vector.load %arg8[%c32_32, %c0_33] : memref<128x128xbf16, #tpu.memory_space<vmem>>, vector<64x128xbf16>
    %c0_34 = arith.constant 0 : index
    %c512 = arith.constant 512 : index
    %70 = vector.load %arg9[%c0_34, %c512] : memref<64x1152xbf16, #tpu.memory_space<vmem>>, vector<64x128xbf16>
    tpu.vector_store %arg9[%c0_34, %c512], %69 {strides = array<i32>} : memref<64x1152xbf16, #tpu.memory_space<vmem>>, vector<64x128xbf16>,
    %c33 = arith.constant 33 : index
    %c0_35 = arith.constant 0 : index
    %71 = vector.load %arg8[%c33, %c0_35] : memref<128x128xbf16, #tpu.memory_space<vmem>>, vector<64x128xbf16>
    %cst_36 = arith.constant 0.000000e+00 : bf16
    %72 = vector.shape_cast %48 : vector<64x1xi1> to vector<64x1xi1>
    %73 = vector.broadcast %72 : vector<64x1xi1> to vector<64x128xi1>
    %74 = vector.broadcast %cst_36 : bf16 to vector<64x128xbf16>
    %75 = arith.select %73, %71, %74 : vector<64x128xi1>, vector<64x128xbf16>
    %c0_37 = arith.constant 0 : index
    %c640 = arith.constant 640 : index
    %76 = vector.load %arg9[%c0_37, %c640] : memref<64x1152xbf16, #tpu.memory_space<vmem>>, vector<64x128xbf16>
    tpu.vector_store %arg9[%c0_37, %c640], %75 {strides = array<i32>} : memref<64x1152xbf16, #tpu.memory_space<vmem>>, vector<64x128xbf16>,
    %c47 = arith.constant 47 : index
    %c0_38 = arith.constant 0 : index
    %77 = vector.load %arg8[%c47, %c0_38] : memref<128x128xbf16, #tpu.memory_space<vmem>>, vector<64x128xbf16>
    %cst_39 = arith.constant 0.000000e+00 : bf16
    %78 = vector.shape_cast %46 : vector<64x1xi1> to vector<64x1xi1>
    %79 = vector.broadcast %78 : vector<64x1xi1> to vector<64x128xi1>
    %80 = vector.broadcast %cst_39 : bf16 to vector<64x128xbf16>
    %81 = arith.select %79, %77, %80 : vector<64x128xi1>, vector<64x128xbf16>
    %c0_40 = arith.constant 0 : index
    %c768 = arith.constant 768 : index
    %82 = vector.load %arg9[%c0_40, %c768] : memref<64x1152xbf16, #tpu.memory_space<vmem>>, vector<64x128xbf16>
    tpu.vector_store %arg9[%c0_40, %c768], %81 {strides = array<i32>} : memref<64x1152xbf16, #tpu.memory_space<vmem>>, vector<64x128xbf16>,
    %c48 = arith.constant 48 : index
    %c0_41 = arith.constant 0 : index
    %83 = vector.load %arg8[%c48, %c0_41] : memref<128x128xbf16, #tpu.memory_space<vmem>>, vector<64x128xbf16>
    %c0_42 = arith.constant 0 : index
    %c896 = arith.constant 896 : index
    %84 = vector.load %arg9[%c0_42, %c896] : memref<64x1152xbf16, #tpu.memory_space<vmem>>, vector<64x128xbf16>
    tpu.vector_store %arg9[%c0_42, %c896], %83 {strides = array<i32>} : memref<64x1152xbf16, #tpu.memory_space<vmem>>, vector<64x128xbf16>,
    %c49 = arith.constant 49 : index
    %c0_43 = arith.constant 0 : index
    %85 = vector.load %arg8[%c49, %c0_43] : memref<128x128xbf16, #tpu.memory_space<vmem>>, vector<64x128xbf16>
    %cst_44 = arith.constant 0.000000e+00 : bf16
    %86 = vector.shape_cast %48 : vector<64x1xi1> to vector<64x1xi1>
    %87 = vector.broadcast %86 : vector<64x1xi1> to vector<64x128xi1>
    %88 = vector.broadcast %cst_44 : bf16 to vector<64x128xbf16>
    %89 = arith.select %87, %85, %88 : vector<64x128xi1>, vector<64x128xbf16>
    %c0_45 = arith.constant 0 : index
    %c1024 = arith.constant 1024 : index
    %90 = vector.load %arg9[%c0_45, %c1024] : memref<64x1152xbf16, #tpu.memory_space<vmem>>, vector<64x128xbf16>
    tpu.vector_store %arg9[%c0_45, %c1024], %89 {strides = array<i32>} : memref<64x1152xbf16, #tpu.memory_space<vmem>>, vector<64x128xbf16>,
    %c0_46 = arith.constant 0 : index
    %c0_47 = arith.constant 0 : index
    %91 = vector.load %arg9[%c0_46, %c0_47] : memref<64x1152xbf16, #tpu.memory_space<vmem>>, vector<64x1152xbf16>
    %c0_48 = arith.constant 0 : index
    %c0_49 = arith.constant 0 : index
    %92 = vector.load %arg4[%c0_48, %c0_49] : memref<1152x128xbf16, #tpu.memory_space<vmem>>, vector<1152x128xbf16>
    %cst_50 = arith.constant dense<0.000000e+00> : vector<64x128xf32>
    %93 = tpu.matmul %91, %92, %cst_50 {dimension_numbers = #tpu.dot_dimension_numbers<[1], [0], [0], [1], [0, 0, 1, 1], [], []>} : vector<64x1152xbf16>, vector<1152x128xbf16>, vector<64x128xf32> -> vector<64x128xf32>
    %94 = vector.broadcast %3 : vector<1x128xf32> to vector<64x128xf32>
    %95 = arith.addf %93, %94 : vector<64x128xf32>
    %cst_51 = arith.constant 0.000000e+00 : f32
    %96 = vector.broadcast %cst_51 : f32 to vector<64x128xf32>
    %97 = arith.maximumf %95, %96 : vector<64x128xf32>
    %98 = arith.truncf %97 : vector<64x128xf32> to vector<64x128xbf16>
    %c0_52 = arith.constant 0 : index
    %c0_53 = arith.constant 0 : index
    %99 = vector.load %arg5[%c0_52, %c0_53] : memref<128x128xbf16, #tpu.memory_space<vmem>>, vector<128x128xbf16>
    %cst_54 = arith.constant dense<0.000000e+00> : vector<64x128xf32>
    %100 = tpu.matmul %98, %99, %cst_54 {dimension_numbers = #tpu.dot_dimension_numbers<[1], [0], [0], [1], [0, 0, 1, 1], [], []>} : vector<64x128xbf16>, vector<128x128xbf16>, vector<64x128xf32> -> vector<64x128xf32>
    %101 = arith.extf %8 : vector<64x128xbf16> to vector<64x128xf32>
    %102 = vector.broadcast %4 : vector<1x128xf32> to vector<64x128xf32>
    %103 = arith.addf %100, %102 : vector<64x128xf32>
    %104 = arith.addf %103, %101 : vector<64x128xf32>
    %cst_55 = arith.constant 0.000000e+00 : f32
    %105 = vector.broadcast %cst_55 : f32 to vector<64x128xf32>
    %106 = arith.maximumf %104, %105 : vector<64x128xf32>
    %107 = arith.truncf %106 : vector<64x128xf32> to vector<64x128xbf16>
    %c0_56 = arith.constant 0 : index
    %c0_57 = arith.constant 0 : index
    %c0_58 = arith.constant 0 : index
    %108 = vector.load %arg7[%c0_56, %c0_57, %c0_58] : memref<1x64x128xbf16, #tpu.memory_space<vmem>>, vector<1x64x128xbf16>
    %109 = vector.shape_cast %108 : vector<1x64x128xbf16> to vector<64x128xbf16>
    %110 = vector.shape_cast %107 : vector<64x128xbf16> to vector<1x64x128xbf16>
    tpu.vector_store %arg7[%c0_56, %c0_57, %c0_58], %110 {strides = array<i32>} : memref<1x64x128xbf16, #tpu.memory_space<vmem>>, vector<1x64x128xbf16>,
    return
  }
  func.func @transform_0(%arg0: i32, %arg1: i32) -> (i32, i32, i32) {
    %c0_i32 = arith.constant 0 : i32
    %c0_i32_0 = arith.constant 0 : i32
    %c0_i32_1 = arith.constant 0 : i32
    return %arg0, %c0_i32, %c0_i32_0 : i32, i32, i32
  }
  func.func @transform_1(%arg0: i32, %arg1: i32) -> (i32, i32) {
    %c0_i32 = arith.constant 0 : i32
    %c0_i32_0 = arith.constant 0 : i32
    %c0_i32_1 = arith.constant 0 : i32
    return %c0_i32, %c0_i32_0 : i32, i32
  }
  func.func @transform_2(%arg0: i32, %arg1: i32) -> (i32, i32) {
    %c0_i32 = arith.constant 0 : i32
    %c0_i32_0 = arith.constant 0 : i32
    %c0_i32_1 = arith.constant 0 : i32
    return %c0_i32, %c0_i32_0 : i32, i32
  }
  func.func @transform_3(%arg0: i32, %arg1: i32) -> (i32, i32) {
    %c0_i32 = arith.constant 0 : i32
    %c0_i32_0 = arith.constant 0 : i32
    %c0_i32_1 = arith.constant 0 : i32
    return %c0_i32, %c0_i32_0 : i32, i32
  }
  func.func @transform_4(%arg0: i32, %arg1: i32) -> (i32, i32) {
    %c0_i32 = arith.constant 0 : i32
    %c0_i32_0 = arith.constant 0 : i32
    %c0_i32_1 = arith.constant 0 : i32
    return %c0_i32, %c0_i32_0 : i32, i32
  }
  func.func @transform_5(%arg0: i32, %arg1: i32) -> (i32, i32, i32) {
    %c0_i32 = arith.constant 0 : i32
    %c0_i32_0 = arith.constant 0 : i32
    return %arg0, %arg1, %c0_i32 : i32, i32, i32
  }
}

</mosaic_0001>

<bundles_post_ra>
// kernel: tpu_custom_call.1
= control target key start
LH: loop header
LB: loop body
LE: loop exit
PB: predicated region body
PF: predicated region fallthrough
CT: control target
= control target key end

     0   :  { %s5601_s0 = inlined_call_operand.hbm [shape: bf16[2,256,128], index: 0, kind: input, shape index: {}]   ;;  %s5602_s1 = inlined_call_operand.hbm [shape: bf16[128,128], index: 1, kind: input, shape index: {}]   ;;  %s5603_s2 = inlined_call_operand.hbm [shape: bf16[1152,128], index: 2, kind: input, shape index: {}]   ;;  %s5604_s3 = inlined_call_operand.hbm [shape: bf16[128,128], index: 3, kind: input, shape index: {}]   ;;  %s5605_s4 = inlined_call_operand.hbm [shape: f32[3,128], index: 4, kind: input, shape index: {}]   ;;  %s5606_s5 = inlined_call_operand.hbm [shape: bf16[2,256,128], index: 5, kind: output, shape index: {}]  }
   0x1   :  { %5623 = sst [smem:[#allocation24_spill]] %s5602_s1 }
   0x2   :  { %5624 = sst [smem:[#allocation25_spill]] %s5603_s2 }
   0x3   :  { %5625 = sst [smem:[#allocation26_spill]] %s5604_s3 }
   0x4   :  { %5626 = sst [smem:[#allocation27_spill]] %s5605_s4 }
   0x5   :  { %10 = vsyncpa [#allocation5], 0 }
   0x6   :  { %12 = vsyncpa [#allocation5 + $0x1], 0 }
   0x7   :  { %13 = vsyncpa [#allocation8], 0 }
   0x8   :  { %14 = vsyncpa [#allocation11], 0 }
   0x9   :  { %15 = vsyncpa [#allocation6], 0 }
   0xa   :  { %17 = vsyncpa [#allocation6 + $0x1], 0  ;;  %s4468_s18 = smov 0   ;;  %s4470_s19 = smov 0  }
   0xb   :  { %s4472_s20 = smov 0   ;;  %s4474_s21 = smov 0  }
   0xc   :  { %s4476_s22 = smov 0   ;;  %s4478_s23 = smov 0  }
   0xd   :  { %s4480_s24 = smov 0   ;;  %s4482_s25 = smov 0  }
   0xe   :  { %s4484_s26 = smov 0   ;;  %s4486_s27 = smov 0  }
   0xf   :  { %s4488_s28 = smov 0  }
  0x10 LB: > { %5627 = sst [smem:[#allocation18_spill]] %s4384_s18  ;;  %s3169_s29 = sadd.s32 4294967295, %s4424_s28   ;;  %s4424_s28 = sphi %s4488_s28, %s23_s28   ;;  %s4420_s27 = sphi %s4486_s27, %s5724_s27   ;;  %s4416_s26 = sphi %s4484_s26, %s5715_s26   ;;  %s4412_s25 = sphi %s4482_s25, %s5723_s25   ;;  %s4408_s24 = sphi %s4480_s24, %s5714_s24   ;;  %s4404_s23 = sphi %s4478_s23, %s5722_s23   ;;  %s4400_s22 = sphi %s4476_s22, %s5721_s22   ;;  %s4396_s21 = sphi %s4474_s21, %s5720_s21   ;;  %s4392_s20 = sphi %s4472_s20, %s5719_s20   ;;  %s4388_s19 = sphi %s4470_s19, %s5718_s19   ;;  %s4384_s18 = sphi %s4468_s18, %s5717_s18  }
  0x11   : > { %5628 = sst [smem:[#allocation19_spill]] %s4416_s26  ;;  %s3170_s30 = sadd.s32 4294967294, %s4424_s28  }
  0x12   : > { %p55_p0 = scmp.ne.s32.totalorder %s4400_s22, %s4396_s21  ;;  %p4524_p1 = scmp.eq.s32.totalorder %s3169_s29, 0 }
  0x13   : > { %p164_p2 = scmp.ne.s32.totalorder %s4392_s20, %s4388_s19  ;;  %p165_p3 = scmp.eq.s32.totalorder %s3169_s29, 7 }
  0x14   : > { %p4532_p4 = por %p4524_p1, %p55_p0  ;;  %p170_p5 = scmp.ne.s32.totalorder %s4388_s19, %s4384_s18 }
  0x15   : > { %p4538_p6 = por %p165_p3, %p164_p2  ;;  %p171_p7 = scmp.eq.s32.totalorder %s3170_s30, 7 }
  0x16   : > { %p3171_p8 = scmp.ge.s32.totalorder %s4424_s28, 1  ;;  %p178_p9 = scmp.lt.s32.totalorder %s4424_s28, 9 }
  0x17   : > { %s5631_s8 = scalar_select %p4538_p6, 1, 0 }
  0x18   : > { %p4544_p10 = por %p171_p7, %p170_p5  ;;  %p4548_p11 = pnand %p3171_p8, %p178_p9 }
  0x19   : > { %5632 = sst [smem:[#allocation20_spill]] %s5631_s8  ;;  %s4426_s14 = smov [#allocation7]  }
  0x1a   : > { %s5633_s9 = scalar_select %p4544_p10, 1, 0 }
  0x1b   : > { %s5636_s1 = sld [smem:[#allocation24_spill]]  ;;  %p4012_p12 = pneg %p4548_p11 }
  0x1c   : > { %5634 = sst [smem:[#allocation21_spill]] %s5633_s9  ;;  %s191_s15 = sshll.u32 %s4426_s14, 4  ;;  %s192_s15 = int_to_ptr.vmem [resolvable:$true] %s191_s15 }
  0x1d   : > { %p4559_p13 = pnand %p4012_p12, %p4524_p1  ;;  %s5638_s3 = sld [smem:[#allocation26_spill]] }
  0x1e   : > { %s5608_s30 = smov 64   ;;  %s5609_s11 = smov 4  }
  0x1f   : > { %s5639_s2 = sld [smem:[#allocation25_spill]]  ;;  %s4429_s9 = smov [#allocation10]  }
  0x20   : > { %s219_s17 = sshll.u32 %s4429_s9, 4  ;;  %s5640_s4 = sld [smem:[#allocation27_spill]]  ;;  %s220_s17 = int_to_ptr.vmem [resolvable:$true] %s219_s17 }
  0x21   : > { %s189_s13 = sshll.u32 %s5636_s1, 4  ;;  %s4431_s9 = smov [#allocation12]   ;;  %s190_s13 = int_to_ptr.hbm [resolvable:$true] %s189_s13 }
  0x22   : > { %4015 = dma.hbm_to_vmem [thread:$0]  (!%p4559_p13), %s190_s13, 1024, %s192_s15, [#allocation8], %s5608_s30, %s5608_s30, %s5609_s11  }
  0x23   : > { %s217_s29 = sshll.u32 %s5638_s3, 4  ;;  %s4430_s13 = smov [#allocation9]   ;;  %s218_s29 = int_to_ptr.hbm [resolvable:$true] %s217_s29 }
  0x24   : > { %4021 = dma.hbm_to_vmem [thread:$0]  (!%p4559_p13), %s218_s29, 1024, %s220_s17, [#allocation11], %s5608_s30, %s5608_s30, %s5609_s11  }
  0x25   : > { %s203_s1 = sshll.u32 %s5639_s2, 4  ;;  %s205_s15 = sshll.u32 %s4430_s13, 4  ;;  %s204_s1 = int_to_ptr.hbm [resolvable:$true] %s203_s1  ;;  %s206_s15 = int_to_ptr.vmem [resolvable:$true] %s205_s15 }
  0x26   : > { %s232_s14 = sshll.u32 %s5640_s4, 4  ;;  %s234_s29 = sshll.u32 %s4431_s9, 4  ;;  %s233_s14 = int_to_ptr.hbm [resolvable:$true] %s232_s14  ;;  %s235_s29 = int_to_ptr.vmem [resolvable:$true] %s234_s29 }
  0x27   : > { %4018 = dma.hbm_to_vmem [thread:$0]  (!%p4559_p13), %s204_s1, 9216, %s206_s15, [#allocation8], %s5608_s30, %s5608_s30, %s5609_s11  }
  0x28   : > { %4024 = dma.hbm_to_vmem [thread:$0]  (!%p4559_p13), %s233_s14, 64, %s235_s29, [#allocation11]  }
  0x29   : > { %s32_s17 = sadd.s32 1, %s4416_s26  ;;  %s35_s13 = sadd.s32 1, %s4420_s27 }
  0x2a   : > { %p33_p0 = scmp.ge.s32.totalorder %s32_s17, 4  ;;  %p49_p2 = scmp.ne.s32.totalorder %s4404_s23, %s4400_s22 }
  0x2b   : > { %s42_s1 = sadd.s32 1, %s4404_s23  ;;  %p50_p3 = scmp.eq.s32.totalorder %s4424_s28, 0 }
  0x2c   : > { %s5726_s17 = smov (%p33_p0, %s32_s17), 0  ;;  %s5728_s13 = smov (!%p33_p0, %s35_s13), %s4420_s27 }
  0x2d   : > { %5641 = sst [smem:[#allocation22_spill]] %s5726_s17  ;;  %p37_p5 = scmp.ge.s32.totalorder %s5728_s13, 2 }
  0x2e   : > { %s150_s15 = ssub.s32 %s4416_s26, %s5726_s17  ;;  %p4600_p7 = por %p50_p3, %p49_p2 }
  0x2f   : > { %s154_s21 = sadd.s32 1, %s4392_s20  ;;  %s5730_s13 = smov (%p37_p5, %s5728_s13), 0 }
  0x30   : > { %5643 = sst [smem:[#allocation23_spill]] %s5730_s13  ;;  %p4037_p8 = scmp.lt.s32.totalorder %s4424_s28, 8 }
  0x31   : > { %s245_s12 = sand.u32 1, %s4404_s23   ;;  %s39_s14 = ssub.s32 %s4420_s27, %s5730_s13 }
  0x32   : > { %s3733_s9 = sshll.u32 %s4420_s27, 7  ;;  %p40_p9 = scmp.eq.s32.totalorder %s39_s14, 0 }
  0x33   : > { %s151_s29 = sor.u32 %s150_s15, %s39_s14  ;;  %s3177_s30 = sshll.u32 %s245_s12, 7 }
  0x34   : > { %p152_p12 = scmp.eq.s32.totalorder %s151_s29, 0  ;;  %s254_s17 = scalar_lea.hbm %s5601_s0, %s3733_s9 }
  0x35   : > { %s4613_s11 = scalar_select %p40_p9, %s4404_s23, %s42_s1  }
  0x36   : > { %s4616_s2 = scalar_select %p152_p12, %s4392_s20, %s154_s21  }
  0x37   : > { %s255_s26 = sshll.u32 %s254_s17, 4  ;;  %s249_s18 = scalar_lea.vmem [#allocation4], %s3177_s30  ;;  %s256_s26 = int_to_ptr.hbm [resolvable:$true] %s255_s26 }
  0x38   : > { %s257_s8 = sshll.u32 %s249_s18, 4  ;;  %p4026_p13 = pnand %p4037_p8, %p4600_p7  ;;  %s258_s8 = int_to_ptr.vmem [resolvable:$true] %s257_s8 }
  0x39   : > { %s246_s13 = scalar_lea.sflag [#allocation5], %s245_s12  ;;  %s5644_s15 = smov 4  }
  0x3a   : > { %s5645_s14 = smov 64   ;;  %269 = sbr.rel (%p4548_p11) target bundleno = 1124 (0x464), region = 40 }
  0x3b   : > { %4028 = dma.hbm_to_vmem [thread:$0]  (!%p4026_p13), %s256_s26, 2048, %s258_s8, %s246_s13, %s5645_s14, %s5645_s14, %s5644_s15  }
  0x3c   : > { %s271_s3 = sand.u32 (!%p4548_p11), 1, %s4400_s22  }
  0x3d   : > { %s3181_s4 = sshll.u32 (!%p4548_p11), %s271_s3, 7  ;;  %s272_s17 = scalar_lea.sflag (!%p4548_p11), [#allocation5], %s271_s3 }
  0x3e   : > { %s4631_s30 = scalar_lea.vmem (!%p4548_p11), [#allocation4], %s3181_s4 }
  0x3f   : > { %4367 = dma.done.wait (%p4532_p4), %s272_s17, 2048  }
  0x40   : > { %4369 = vsyncadd (%p4532_p4), %s272_s17, 4294965248 }
  0x41   : > { %4371 = dma.done.wait (%p4524_p1), [#allocation8], 10240  }
  0x42   : > { %4373 = vsyncadd (%p4524_p1), [#allocation8], 4294957056 }
  0x43   : > { %4375 = dma.done.wait (%p4524_p1), [#allocation11], 1088  }
  0x44   : > { %4377 = vsyncadd (%p4524_p1), [#allocation11], 4294966208  ;;  %s320_s18 = sand.u32 1, %s4388_s19   ;;  %s4647_s26 = sshll.u32 %s4408_s24, 6  ;;  %v4654_v0 = vld [vmem:[#allocation12 + $0x1] sm:$0x1] }
  0x45   : > { %s4651_s7 = sshll.u32 %s320_s18, 5  ;;  %s347_s8 = sshra.s32 %s4647_s26, 3  ;;  %v4656_v1 = vld [vmem:[#allocation12 + $0x2] sm:$0x1]  ;;  %v4658_v2 = vld [vmem:[#allocation7 + $0x38] sm:$0xff]  ;;  %v4662_v3 = vld [vmem:[#allocation7 + $0x30] sm:$0xff] }
  0x46   : > { %s3188_s10 = sshll.u32 %s347_s8, 2  ;;  %432 = vmatpush.bf16.msra.mxu0 %v4658_v2  ;;  %3936 = vmatpush.bf16.msra.mxu1 %v4658_v2  ;;  %v4683_v8 = vld [vmem:[#allocation7 + $0x28] sm:$0xff]  ;;  %v4689_v9 = vld [vmem:[#allocation7 + $0x20] sm:$0xff]  ;;  %v4695_v10 = vld [vmem:[#allocation7 + $0x18] sm:$0xff]  ;;  %s4736_s13 = scalar_lea.vmem [#allocation13], %s4651_s7 }
  0x47   : > { %s4665_s6 = scalar_lea.vmem %s4631_s30, %s3188_s10 [#allocation4]  ;;  %3937 = vmatpush.bf16.msra.mxu2 %v4658_v2  ;;  %3938 = vmatpush.bf16.msra.mxu3 %v4658_v2  ;;  %v4701_v11 = vld [vmem:[#allocation7 + $0x10] sm:$0xff]  ;;  %v4707_v12 = vld [vmem:[#allocation7 + $0x8] sm:$0xff]  ;;  %v4713_v13 = vld [vmem:[#allocation7] sm:$0xff]  ;;  %p3237_p1 = scmp.ne.s32.totalorder %s4408_s24, 0 }
  0x48   : > { %v4670_v4 = vld [vmem:[%s4665_s6] sm:$0xff]   ;;  %v4673_v5 = vld [vmem:[%s4665_s6 + $0x8] sm:$0xff]   ;;  %v4676_v6 = vld [vmem:[%s4665_s6 + $0x10] sm:$0xff]  }
  0x49   : > { %v4679_v7 = vld [vmem:[%s4665_s6 + $0x18] sm:$0xff]   ;;  %v3742_v14 = vld [vmem:[%s4665_s6] sm:$0xff]  ;;  %v3743_v15 = vld [vmem:[%s4665_s6 + $0x8] sm:$0xff] }
  0x4a   : > { %433 = vmatpush.bf16.msra.mxu0 %v4662_v3  ;;  %3939 = vmatpush.bf16.msra.mxu1 %v4662_v3  ;;  %v3744_v16 = vld [vmem:[%s4665_s6 + $0x10] sm:$0xff]  ;;  %v3745_v17 = vld [vmem:[%s4665_s6 + $0x18] sm:$0xff]  ;;  %v4725_v20 = vld [vmem:[#allocation12] ss:$0 sm:$0xff] }
  0x4b   : > { %3940 = vmatpush.bf16.msra.mxu2 %v4662_v3  ;;  %3941 = vmatpush.bf16.msra.mxu3 %v4662_v3 }
  0x4e   : > { %434 = vmatpush.bf16.msra.mxu0 %v4683_v8  ;;  %3942 = vmatpush.bf16.msra.mxu1 %v4683_v8 }
  0x4f   : > { %3943 = vmatpush.bf16.msra.mxu2 %v4683_v8  ;;  %3944 = vmatpush.bf16.msra.mxu3 %v4683_v8 }
  0x52   : > { %435 = vmatpush.bf16.msra.mxu0 %v4689_v9  ;;  %3945 = vmatpush.bf16.msra.mxu1 %v4689_v9 }
  0x53   : > { %3946 = vmatpush.bf16.msra.mxu2 %v4689_v9  ;;  %3947 = vmatpush.bf16.msra.mxu3 %v4689_v9 }
  0x56   : > { %436 = vmatpush.bf16.msra.mxu0 %v4695_v10  ;;  %3948 = vmatpush.bf16.msra.mxu1 %v4695_v10 }
  0x57   : > { %3949 = vmatpush.bf16.msra.mxu2 %v4695_v10  ;;  %3950 = vmatpush.bf16.msra.mxu3 %v4695_v10 }
  0x5a   : > { %437 = vmatpush.bf16.msra.mxu0 %v4701_v11  ;;  %3951 = vmatpush.bf16.msra.mxu1 %v4701_v11 }
  0x5b   : > { %3952 = vmatpush.bf16.msra.mxu2 %v4701_v11  ;;  %3953 = vmatpush.bf16.msra.mxu3 %v4701_v11 }
  0x5e   : > { %438 = vmatpush.bf16.msra.mxu0 %v4707_v12  ;;  %3954 = vmatpush.bf16.msra.mxu1 %v4707_v12 }
  0x5f   : > { %3955 = vmatpush.bf16.msra.mxu2 %v4707_v12  ;;  %3956 = vmatpush.bf16.msra.mxu3 %v4707_v12 }
  0x62   : > { %439 = vmatpush.bf16.msra.mxu0 %v4713_v13  ;;  %3957 = vmatpush.bf16.msra.mxu1 %v4713_v13 }
  0x63   : > { %3958 = vmatpush.bf16.msra.mxu2 %v4713_v13  ;;  %3959 = vmatpush.bf16.msra.mxu3 %v4713_v13 }
  0x65   : > { %440 = vmatmul.bf16.vlgmr.msra.gmra.mxu0 %v3742_v14  ;;  %445 = vmatmul.bf16.vlgmr.msra.gmra.mxu1 %v3743_v15 }
  0x66   : > { %450 = vmatmul.bf16.vlgmr.msra.gmra.mxu2 %v3744_v16  ;;  %455 = vmatmul.bf16.vlgmr.msra.gmra.mxu3 %v3745_v17 }
  0xe2   : > { %v441_v18 = vpop.f32.mrf.mxu0  ;;  %v446_v19 = vpop.f32.mrf.mxu1 }
  0xe3   : > { %v442_v21 = vadd.f32 %v4725_v20, %v441_v18  ;;  %v447_v22 = vadd.f32 %v4725_v20, %v446_v19 }
  0xe5   : > { %v461_v29 = vmax.f32 %v442_v21, 0.0  ;;  %v463_v30 = vmax.f32 %v447_v22, 0.0 }
  0xe9   : > { %v451_v23 = vpop.f32.mrf.mxu2  ;;  %v456_v24 = vpop.f32.mrf.mxu3 }
  0xea   : > { %v443_v25 = vpop.f32.mrf.mxu0  ;;  %v448_v26 = vpop.f32.mrf.mxu1  ;;  %v452_v35 = vadd.f32 %v4725_v20, %v451_v23  ;;  %v457_v36 = vadd.f32 %v4725_v20, %v456_v24 }
  0xeb   : > { %v444_v27 = vadd.f32 %v4725_v20, %v443_v25  ;;  %v449_v28 = vadd.f32 %v4725_v20, %v448_v26 }
  0xec   : > { %v465_v41 = vmax.f32 %v452_v35, 0.0  ;;  %v467_v42 = vmax.f32 %v457_v36, 0.0 }
  0xed   : > { %v462_v31 = vmax.f32 %v444_v27, 0.0  ;;  %v464_v32 = vmax.f32 %v449_v28, 0.0 }
  0xef   : > { %v3869_v33 = vpack.c.bf16 %v462_v31, %v461_v29  ;;  %v3874_v34 = vpack.c.bf16 %v464_v32, %v463_v30 }
  0xf1   : > { %3926 = vst [vmem:[#allocation2 + $0x10] sm:$0xff] %v3869_v33   ;;  %v453_v37 = vpop.f32.mrf.mxu2  ;;  %v458_v38 = vpop.f32.mrf.mxu3 }
  0xf2   : > { %3927 = vst [vmem:[#allocation2 + $0x18] sm:$0xff] %v3874_v34   ;;  %v454_v39 = vadd.f32 %v4725_v20, %v453_v37  ;;  %v459_v40 = vadd.f32 %v4725_v20, %v458_v38 }
  0xf4   : > { %v466_v43 = vmax.f32 %v454_v39, 0.0  ;;  %v468_v44 = vmax.f32 %v459_v40, 0.0 }
  0xf5   : > { %488 = sbr.rel (%p3237_p1) target bundleno = 254 (0xfe), region = 64 }
  0xf6   : > { %v3879_v45 = vpack.c.bf16 %v466_v43, %v465_v41  ;;  %v3884_v46 = vpack.c.bf16 %v468_v44, %v467_v42 }
  0xf8   : > { %3928 = vst [vmem:[#allocation2 + $0x20] sm:$0xff] %v3879_v45  }
  0xf9   : > { %3929 = vst [vmem:[#allocation2 + $0x28] sm:$0xff] %v3884_v46  }
  0xfa   : > { %v4432_v47 = vmov 0  }
  0xfb   : > { %490 = vst [vmem:[#allocation2 + $0x4] sm:$0xf] %v4432_v47 }
  0xfc   : > { %491 = vst [vmem:[#allocation2 + $0x8] sm:$0xf] %v4432_v47 }
  0xfd   : > { %492 = vst [vmem:[#allocation2 + $0xc] sm:$0xf] %v4432_v47 }
  0xfe PF: > { %p3238_p4 = scmp.le.s32.totalorder %s4408_s24, 0 }
  0xff   : > { %s3239_s1 = sadd.s32 (!%p3238_p4), 4294967264, %s4647_s26 }
 0x100   : > { %496 = sbr.rel (%p3238_p4) target bundleno = 434 (0x1b2), region = 68  ;;  %s498_s16 = sshra.s32 (!%p3238_p4), %s3239_s1, 3 }
 0x101   : > { %s3240_s21 = sshll.u32 (!%p3238_p4), %s498_s16, 2 }
 0x102   : > { %s501_s12 = scalar_lea.vmem (!%p3238_p4), %s4631_s30, %s3240_s21 [#allocation4] }
 0x105   : > { %518 = vmatpush.bf16.msra.mxu0 %v4658_v2  ;;  %3960 = vmatpush.bf16.msra.mxu1 %v4658_v2  ;;  %v3746_v48 = vld [vmem:[%s501_s12] sm:$0xff]  ;;  %v3747_v49 = vld [vmem:[%s501_s12 + $0x8] sm:$0xff] }
 0x109   : > { %519 = vmatpush.bf16.msra.mxu0 %v4662_v3  ;;  %3961 = vmatpush.bf16.msra.mxu1 %v4662_v3 }
 0x10d   : > { %520 = vmatpush.bf16.msra.mxu0 %v4683_v8  ;;  %3962 = vmatpush.bf16.msra.mxu1 %v4683_v8 }
 0x111   : > { %521 = vmatpush.bf16.msra.mxu0 %v4689_v9  ;;  %3963 = vmatpush.bf16.msra.mxu1 %v4689_v9 }
 0x115   : > { %522 = vmatpush.bf16.msra.mxu0 %v4695_v10  ;;  %3964 = vmatpush.bf16.msra.mxu1 %v4695_v10 }
 0x119   : > { %523 = vmatpush.bf16.msra.mxu0 %v4701_v11  ;;  %3965 = vmatpush.bf16.msra.mxu1 %v4701_v11 }
 0x11d   : > { %524 = vmatpush.bf16.msra.mxu0 %v4707_v12  ;;  %3966 = vmatpush.bf16.msra.mxu1 %v4707_v12 }
 0x121   : > { %525 = vmatpush.bf16.msra.mxu0 %v4713_v13  ;;  %3967 = vmatpush.bf16.msra.mxu1 %v4713_v13 }
 0x124   : > { %526 = vmatmul.bf16.vlgmr.msra.gmra.mxu0 %v3746_v48  ;;  %531 = vmatmul.bf16.vlgmr.msra.gmra.mxu1 %v3747_v49 }
 0x1a1   : > { %v527_v50 = vpop.f32.mrf.mxu0  ;;  %v532_v51 = vpop.f32.mrf.mxu1 }
 0x1a2   : > { %v528_v52 = vadd.f32 %v4725_v20, %v527_v50  ;;  %v533_v53 = vadd.f32 %v4725_v20, %v532_v51 }
 0x1a4   : > { %v537_v58 = vmax.f32 %v528_v52, 0.0  ;;  %v539_v59 = vmax.f32 %v533_v53, 0.0 }
 0x1a9   : > { %v529_v54 = vpop.f32.mrf.mxu0  ;;  %v534_v55 = vpop.f32.mrf.mxu1 }
 0x1aa   : > { %v530_v56 = vadd.f32 %v4725_v20, %v529_v54  ;;  %v535_v57 = vadd.f32 %v4725_v20, %v534_v55 }
 0x1ac   : > { %v538_v60 = vmax.f32 %v530_v56, 0.0  ;;  %v540_v61 = vmax.f32 %v535_v57, 0.0 }
 0x1ae   : > { %v3889_v62 = vpack.c.bf16 %v538_v60, %v537_v58  ;;  %v3894_v63 = vpack.c.bf16 %v540_v61, %v539_v59 }
 0x1b0   : > { %3890 = vst [vmem:[#allocation2] sm:$0xff] %v3889_v62  }
 0x1b1   : > { %3930 = vst [vmem:[#allocation2 + $0x8] sm:$0xff] %v3894_v63  }
 0x1b2 PF: > { %p3249_p11 = scmp.ne.s32.totalorder %s4408_s24, 3 }
 0x1b4   : > { %552 = sbr.rel (%p3249_p11) target bundleno = 445 (0x1bd), region = 72 }
 0x1b9   : > { %v4433_v14 = vmov 0  }
 0x1ba   : > { %553 = vst [vmem:[#allocation2 + $0x30] sm:$0xf] %v4433_v14 }
 0x1bb   : > { %554 = vst [vmem:[#allocation2 + $0x34] sm:$0xf] %v4433_v14 }
 0x1bc   : > { %555 = vst [vmem:[#allocation2 + $0x38] sm:$0xf] %v4433_v14 }
 0x1bd PF: > { %p3250_p0 = scmp.ge.s32.totalorder %s4408_s24, 3 }
 0x1be   : > { %s561_s9 = sadd.s32 (!%p3250_p0), 64, %s4647_s26 }
 0x1bf   : > { %560 = sbr.rel (%p3250_p0) target bundleno = 625 (0x271), region = 76  ;;  %s562_s29 = sshra.s32 (!%p3250_p0), %s561_s9, 3 }
 0x1c0   : > { %s3251_s15 = sshll.u32 (!%p3250_p0), %s562_s29, 2 }
 0x1c1   : > { %s565_s14 = scalar_lea.vmem (!%p3250_p0), %s4631_s30, %s3251_s15 [#allocation4] }
 0x1c4   : > { %582 = vmatpush.bf16.msra.mxu0 %v4658_v2  ;;  %3968 = vmatpush.bf16.msra.mxu1 %v4658_v2  ;;  %v3748_v2 = vld [vmem:[%s565_s14] sm:$0xff] }
 0x1c8   : > { %583 = vmatpush.bf16.msra.mxu0 %v4662_v3  ;;  %3969 = vmatpush.bf16.msra.mxu1 %v4662_v3  ;;  %v3749_v3 = vld [vmem:[%s565_s14 + $0x8] sm:$0xff] }
 0x1cc   : > { %584 = vmatpush.bf16.msra.mxu0 %v4683_v8  ;;  %3970 = vmatpush.bf16.msra.mxu1 %v4683_v8 }
 0x1d0   : > { %585 = vmatpush.bf16.msra.mxu0 %v4689_v9  ;;  %3971 = vmatpush.bf16.msra.mxu1 %v4689_v9 }
 0x1d4   : > { %586 = vmatpush.bf16.msra.mxu0 %v4695_v10  ;;  %3972 = vmatpush.bf16.msra.mxu1 %v4695_v10 }
 0x1d8   : > { %587 = vmatpush.bf16.msra.mxu0 %v4701_v11  ;;  %3973 = vmatpush.bf16.msra.mxu1 %v4701_v11 }
 0x1dc   : > { %588 = vmatpush.bf16.msra.mxu0 %v4707_v12  ;;  %3974 = vmatpush.bf16.msra.mxu1 %v4707_v12 }
 0x1e0   : > { %589 = vmatpush.bf16.msra.mxu0 %v4713_v13  ;;  %3975 = vmatpush.bf16.msra.mxu1 %v4713_v13 }
 0x1e3   : > { %590 = vmatmul.bf16.vlgmr.msra.gmra.mxu0 %v3748_v2  ;;  %595 = vmatmul.bf16.vlgmr.msra.gmra.mxu1 %v3749_v3 }
 0x260   : > { %v591_v8 = vpop.f32.mrf.mxu0  ;;  %v596_v9 = vpop.f32.mrf.mxu1 }
 0x261   : > { %v592_v10 = vadd.f32 %v4725_v20, %v591_v8  ;;  %v597_v11 = vadd.f32 %v4725_v20, %v596_v9 }
 0x263   : > { %v601_v18 = vmax.f32 %v592_v10, 0.0  ;;  %v603_v19 = vmax.f32 %v597_v11, 0.0 }
 0x268   : > { %v593_v15 = vpop.f32.mrf.mxu0  ;;  %v598_v16 = vpop.f32.mrf.mxu1 }
 0x269   : > { %v594_v17 = vadd.f32 %v4725_v20, %v593_v15  ;;  %v599_v12 = vadd.f32 %v4725_v20, %v598_v16 }
 0x26b   : > { %v602_v21 = vmax.f32 %v594_v17, 0.0  ;;  %v604_v22 = vmax.f32 %v599_v12, 0.0 }
 0x26d   : > { %v3899_v23 = vpack.c.bf16 %v602_v21, %v601_v18  ;;  %v3904_v13 = vpack.c.bf16 %v604_v22, %v603_v19 }
 0x26f   : > { %3931 = vst [vmem:[#allocation2 + $0x30] sm:$0xff] %v3899_v23  }
 0x270   : > { %3932 = vst [vmem:[#allocation2 + $0x38] sm:$0xff] %v3904_v13  }
 0x271 PF: > { %v3801_v24 = vld [vmem:[#allocation9 + $0x78] sm:$0xff]  ;;  %v613_v26 = vlaneseq  ;;  %v3800_v27 = vld [vmem:[#allocation9 + $0x70] sm:$0xff]  ;;  %v3799_v35 = vld [vmem:[#allocation9 + $0x68] sm:$0xff]  ;;  %vm4434_vm0 = vmmov 1   ;;  %v5616_v41 = vmov 0   ;;  %s3728_s3 = sshll.u32 %s4408_s24, 3 }
 0x272   : > { %v3793_v25 = vld [vmem:[#allocation9 + $0x38] sm:$0xff]  ;;  %3984 = vmatpush.bf16.msra.mxu3 %v3801_v24  ;;  %v3792_v28 = vld [vmem:[#allocation9 + $0x30] sm:$0xff]  ;;  %2642 = vmatpush.bf16.msra.mxu1 %v3801_v24  ;;  %v3791_v36 = vld [vmem:[#allocation9 + $0x28] sm:$0xff]  ;;  %vm775_vm5 = vsmask.f32 3328  ;;  %v4835_v59 = vunpack.c.l.b16 %v5616_v41  ;;  %v4855_v10 = vunpack.c.h.b16 %v5616_v41  ;;  %s3729_s4 = sshll.u32 %s4412_s25, 5 }
 0x273   : > { %3976 = vmatpush.bf16.msra.mxu2 %v3793_v25  ;;  %v4786_v29 = vshrl.u32 %v613_v26, 7  ;;  %2613 = vmatpush.bf16.msra.mxu0 %v3793_v25  ;;  %v1028_v32 = vld [vmem:[#allocation2 + $0x18] sm:$0xf]  ;;  %v1029_v33 = vld [vmem:[#allocation2 + $0x1c] sm:$0xf]  ;;  %vm760_vm1 = vmpackc.low %vm4434_vm0, %vm4434_vm0  ;;  %s3032_s17 = sadd.s32 %s3729_s4, %s3728_s3  ;;  %s3035_s24 = sshll.u32 %s4736_s13, 4  ;;  %s3036_s24 = int_to_ptr.vmem [resolvable:$true] %s3035_s24 }
 0x274   : > { %1036 = vst [vmem:[#allocation3 + $0x94] sm:$0xf] %v1028_v32  ;;  %v4801_v42 = vsel %vm760_vm1, 65537, %v5616_v41  ;;  %v3798_v47 = vld [vmem:[#allocation9 + $0x60] sm:$0xff]  ;;  %vm776_vm8 = vsmask.f32 7440 }
 0x275   : > { %v618_v20 = vadd.s32 32, %v4786_v29  ;;  %v620_v30 = vadd.s32 48, %v4786_v29  ;;  %v616_v31 = vadd.s32 16, %v4786_v29  ;;  %v626_v34 = vand.u32 15, %v4786_v29  ;;  %1037 = vst [vmem:[#allocation3 + $0xb8] sm:$0xf] %v1029_v33  ;;  %vm4843_vm12 = vmor %vm775_vm5, %vm776_vm8 }
 0x276   : > { %3985 = vmatpush.bf16.msra.mxu3 %v3800_v27  ;;  %2643 = vmatpush.bf16.msra.mxu1 %v3800_v27  ;;  %v788_v44 = vshll.u32 %v4801_v42, 16  ;;  %v792_v45 = vshrl.u32 %v4801_v42, 16  ;;  %v3790_v48 = vld [vmem:[#allocation9 + $0x20] sm:$0xff]  ;;  %v3797_v61 = vld [vmem:[#allocation9 + $0x58] sm:$0xff]  ;;  %v3796_v16 = vld [vmem:[#allocation9 + $0x50] sm:$0xff]  ;;  %v4860_v19 = vadd.s32 8, %v4786_v29 }
 0x277   : > { %3977 = vmatpush.bf16.msra.mxu2 %v3792_v28  ;;  %v654_v37 = vand.u32 15, %v618_v20  ;;  %v668_v38 = vand.u32 15, %v620_v30  ;;  %2614 = vmatpush.bf16.msra.mxu0 %v3792_v28  ;;  %v640_v43 = vand.u32 15, %v616_v31  ;;  %vm4808_vm6 = vcmp.ge.s32.totalorder %v626_v34, 1  ;;  %v3789_v62 = vld [vmem:[#allocation9 + $0x18] sm:$0xff]  ;;  %v3788_v26 = vld [vmem:[#allocation9 + $0x10] sm:$0xff] }
 0x278   : > { %v4825_v52 = vrot.slane %v788_v44, 5  ;;  %v794_v53 = vrot.slane %v792_v45, 4  ;;  %vm759_vm10 = vmpackc.low %vm4808_vm6, %vm4808_vm6  ;;  %vm929_vm13 = vsmask.f32 256  ;;  %vm930_vm14 = vsmask.f32 4368 }
 0x279   : > { %vm4792_vm2 = vcmp.ge.s32.totalorder %v654_v37, 1  ;;  %vm4796_vm3 = vcmp.ge.s32.totalorder %v668_v38, 1  ;;  %vm4816_vm9 = vcmp.ge.s32.totalorder %v640_v43, 1  ;;  %v767_v60 = vsel %vm759_vm10, 65537, %v5616_v41  ;;  %v1024_v24 = vld [vmem:[#allocation2 + $0x8] sm:$0xf] }
 0x27a   : > { %vm763_vm4 = vmpackc.low %vm4792_vm2, %vm4792_vm2  ;;  %3986 = vmatpush.bf16.msra.mxu3 %v3799_v35  ;;  %2644 = vmatpush.bf16.msra.mxu1 %v3799_v35  ;;  %v795_v57 = vor.u32 %v794_v53, %v4825_v52  ;;  %v779_v8 = vshll.u32 %v767_v60, 16  ;;  %v782_v11 = vshrl.u32 %v767_v60, 16  ;;  %v1025_v25 = vld [vmem:[#allocation2 + $0xc] sm:$0xf]  ;;  %v738_v27 = vld [vmem:[#allocation2 + $0x14] sm:$0xf] }
 0x27b   : > { %3978 = vmatpush.bf16.msra.mxu2 %v3791_v36  ;;  %vm765_vm7 = vmpackc.low %vm4796_vm3, %vm4796_vm3  ;;  %v771_v49 = vsel %vm763_vm4, 65537, %v5616_v41  ;;  %2615 = vmatpush.bf16.msra.mxu0 %v3791_v36  ;;  %1032 = vst [vmem:[#allocation3 + $0x4] sm:$0xf] %v1024_v24  ;;  %v1030_v36 = vld [vmem:[#allocation2 + $0x20] sm:$0xf]  ;;  %v3795_v40 = vld [vmem:[#allocation9 + $0x48] sm:$0xff] }
 0x27c   : > { %v4821_v51 = vsel %vm765_vm7, 65537, %v5616_v41  ;;  %v818_v54 = vshll.u32 %v771_v49, 16  ;;  %v822_v55 = vshrl.u32 %v771_v49, 16  ;;  %vm761_vm11 = vmpackc.low %vm4816_vm9, %vm4816_vm9  ;;  %v4852_v9 = vrot.slane %v795_v57, 4  ;;  %1033 = vst [vmem:[#allocation3 + $0x28] sm:$0xf] %v1025_v25 }
 0x27d   : > { %v838_v56 = vshll.u32 %v4821_v51, 16  ;;  %v4850_v3 = vsel %vm761_vm11, 65537, %v5616_v41  ;;  %v842_v12 = vshrl.u32 %v4821_v51, 16  ;;  %v781_v18 = vrot.slane %v779_v8, 5  ;;  %v1031_v37 = vld [vmem:[#allocation2 + $0x24] sm:$0xf]  ;;  %vm4934_vm11 = vmor %vm929_vm13, %vm930_vm14 }
 0x27e   : > { %v820_v58 = vrot.slane %v818_v54, 5  ;;  %3987 = vmatpush.bf16.msra.mxu3 %v3798_v47  ;;  %v824_v14 = vrot.slane %v822_v55, 4  ;;  %2645 = vmatpush.bf16.msra.mxu1 %v3798_v47  ;;  %v798_v15 = vshll.u32 %v4850_v3, 16  ;;  %v784_v23 = vrot.slane %v782_v11, 4  ;;  %v740_v38 = vld [vmem:[#allocation2 + $0x1c] sm:$0xf] }
 0x27f   : > { %3979 = vmatpush.bf16.msra.mxu2 %v3790_v48  ;;  %v4847_v2 = vrot.slane %v838_v56, 5  ;;  %2616 = vmatpush.bf16.msra.mxu0 %v3790_v48  ;;  %v857_v35 = vunpack.c.l.b16 %v781_v18  ;;  %1038 = vst [vmem:[#allocation3 + $0xdc] sm:$0xf] %v1030_v36  ;;  %v5656_v43 = vmov 0  ;;  %v3787_v49 = vld [vmem:[#allocation9 + $0x8] sm:$0xff]  ;;  %v5658_v53 = vmov 0 }
 0x280   : > { %v825_v17 = vor.u32 %v824_v14, %v820_v58  ;;  %v821_v21 = vsel %vm4843_vm12, %v4852_v9, %v820_v58  ;;  %v4869_v13 = vrot.slane %v798_v15, 5  ;;  %v785_v33 = vor.u32 %v784_v23, %v781_v18  ;;  %1039 = vst [vmem:[#allocation3 + $0x100] sm:$0xf] %v1031_v37  ;;  %v739_v50 = vld [vmem:[#allocation2 + $0x18] sm:$0xf]  ;;  %s3730_s30 = sshll.u32 %s3032_s17, 2 }
 0x281   : > { %v841_v22 = vsel %vm4843_vm12, %v4852_v9, %v4847_v2  ;;  %v885_v20 = vunpack.c.l.b16 %v821_v21  ;;  %v886_v30 = vunpack.c.h.b16 %v821_v21  ;;  %v858_v55 = vunpack.c.h.b16 %v781_v18  ;;  %v734_v11 = vld [vmem:[#allocation2 + $0x4] sm:$0x8]  ;;  %v735_v15 = vld [vmem:[#allocation2 + $0x8] sm:$0xf]  ;;  %v3817_v18 = vld [vmem:[#allocation9 + $0xf8] sm:$0xff]  ;;  %s3034_s8 = scalar_lea.hbm %s5606_s5, %s3730_s30  ;;  %s3021_s6 = scalar_lea.sflag [#allocation6], %s320_s18 }
 0x282   : > { %3988 = vmatpush.bf16.msra.mxu3 %v3797_v61  ;;  %v826_v28 = vrot.slane %v825_v17, 4  ;;  %v899_v31 = vunpack.c.l.b16 %v841_v22  ;;  %2646 = vmatpush.bf16.msra.mxu1 %v3797_v61  ;;  %v900_v32 = vunpack.c.h.b16 %v841_v22  ;;  %v4875_v34 = vsel %vm4843_vm12, %v4852_v9, %v4869_v13  ;;  %v4907_v61 = vld [vmem:[#allocation9 + $0x40] sm:$0xff]  ;;  %v4917_v17 = vld [vmem:[#allocation3 + $0x94] sm:$0xf]  ;;  %v736_v36 = vld [vmem:[#allocation2 + $0xc] sm:$0xf] }
 0x283   : > { %3980 = vmatpush.bf16.msra.mxu2 %v3789_v62  ;;  %2617 = vmatpush.bf16.msra.mxu0 %v3789_v62  ;;  %vm889_vm15 = vcmp.ne.s32.totalorder %v885_v20, %v4835_v59  ;;  %vm890_vm0 = vcmp.ne.s32.totalorder %v886_v30, %v4855_v10  ;;  %v786_v48 = vrot.slane %v785_v33, 4  ;;  %vm4897_vm5 = vcmp.ne.s32.totalorder %v857_v35, %v4835_v59  ;;  %v1027_v37 = vld [vmem:[#allocation2 + $0x14] sm:$0xf]  ;;  %v1327_v41 = vld [vmem:[#allocation2 + $0x18] sm:$0xf]  ;;  %s3037_s25 = sshll.u32 %s3034_s8, 4  ;;  %s3038_s25 = int_to_ptr.hbm [resolvable:$true] %s3037_s25 }
 0x284   : > { %v831_v39 = vsel %vm4843_vm12, %v826_v28, %v4825_v52  ;;  %vm903_vm1 = vcmp.ne.s32.totalorder %v899_v31, %v4835_v59  ;;  %vm4883_vm2 = vmpackc.low %vm890_vm0, %vm889_vm15  ;;  %vm904_vm3 = vcmp.ne.s32.totalorder %v900_v32, %v4855_v10  ;;  %v871_v57 = vunpack.c.l.b16 %v4875_v34  ;;  %v3786_v28 = vld [vmem:[#allocation9] sm:$0xff]  ;;  %1035 = vst [vmem:[#allocation3 + $0x70] sm:$0xf] %v1027_v37  ;;  %s4308_s1 = sshra.s32 %s3038_s25, 4  ;;  %s4314_s9 = scalar_lea.hbm %s5606_s5, 256  ;;  %s4309_s1 = int_to_ptr.hbm [resolvable:$true] %s4308_s1 }
 0x285   : > { %v5657_v43 = vsel %vm4883_vm2, 4294967295, %v5656_v43  ;;  %v892_v46 = vunpack.c.l.b16 %v831_v39  ;;  %v893_v47 = vunpack.c.h.b16 %v831_v39  ;;  %vm4888_vm4 = vmpackc.low %vm904_vm3, %vm903_vm1  ;;  %v4894_v54 = vsel %vm4883_vm2, %v738_v27, 0  ;;  %v3339_v27 = vld [vmem:[#allocation3 + $0xb4] sm:$0xf0]  ;;  %s4310_s16 = scalar_lea.hbm %s4309_s1, 32  ;;  %p4315_p7 = scmp.lt.s32.totalorder %s4309_s1, %s5606_s5 }
 0x286   : > { %3989 = vmatpush.bf16.msra.mxu3 %v3796_v16  ;;  %v5659_v53 = vsel %vm4888_vm4, 4294967295, %v5658_v53  ;;  %2647 = vmatpush.bf16.msra.mxu1 %v3796_v16  ;;  %v926_v58 = vsel %vm4888_vm4, %v740_v38, 0  ;;  %v965_v60 = vshrl.u32 %v4894_v54, 16  ;;  %v5662_v62 = vmov 0  ;;  %v3809_v39 = vld [vmem:[#allocation9 + $0xb8] sm:$0xff]  ;;  %p4311_p2 = scmp.ne.s32.totalorder %s4309_s1, %s4310_s16  ;;  %p4316_p8 = scmp.lt.s32.totalorder %s4314_s9, %s4310_s16 }
 0x287   : > { %3981 = vmatpush.bf16.msra.mxu2 %v3788_v26  ;;  %2618 = vmatpush.bf16.msra.mxu0 %v3788_v26  ;;  %vm896_vm6 = vcmp.ne.s32.totalorder %v892_v46, %v4835_v59  ;;  %vm897_vm7 = vcmp.ne.s32.totalorder %v893_v47, %v4855_v10  ;;  %v983_v14 = vshrl.u32 %v926_v58, 16  ;;  %v986_v8 = vshll.u32 %v926_v58, 16  ;;  %v1026_v26 = vld [vmem:[#allocation2 + $0x10] sm:$0xf]  ;;  %v4950_v47 = vld [vmem:[#allocation2 + $0x14] sm:$0x8] }
 0x288   : > { %vm4909_vm8 = vmpackc.low %vm897_vm7, %vm896_vm6  ;;  %v791_v16 = vsel %vm4843_vm12, %v786_v48, %v4825_v52  ;;  %vm862_vm9 = vcmp.ne.s32.totalorder %v858_v55, %v4855_v10  ;;  %v4921_v22 = vrot.slane %v965_v60, 7  ;;  %v872_v32 = vunpack.c.h.b16 %v4875_v34  ;;  %v1569_v48 = vld [vmem:[#allocation2 + $0x18] sm:$0xf]  ;;  %1034 = vst [vmem:[#allocation3 + $0x4c] sm:$0xf] %v1026_v26  ;;  %p4312_p3 = pnand %p4311_p2, %p4538_p6  ;;  %p4317_p9 = por %p4316_p8, %p4315_p7 }
 0x289   : > { %v5663_v62 = vsel %vm4909_vm8, 4294967295, %v5662_v62  ;;  %v925_v21 = vsel %vm4909_vm8, %v739_v50, 0  ;;  %vm4925_vm10 = vmpackc.low %vm862_vm9, %vm4897_vm5  ;;  %v864_v24 = vunpack.c.l.b16 %v791_v16  ;;  %v865_v25 = vunpack.c.h.b16 %v791_v16  ;;  %v3750_v58 = vld [vmem:[#allocation3 + $0x4] sm:$0xf]  ;;  %v3267_v16 = vld [vmem:[#allocation3 + $0x24] sm:$0xf0] }
 0x28a   : > { %3990 = vmatpush.bf16.msra.mxu3 %v3795_v40  ;;  %v974_v20 = vshrl.u32 %v925_v21, 16  ;;  %v977_v30 = vshll.u32 %v925_v21, 16  ;;  %v4929_v31 = vrot.slane %v983_v14, 7  ;;  %2648 = vmatpush.bf16.msra.mxu1 %v3795_v40  ;;  %v972_v35 = vrot.slane %v4921_v22, 4  ;;  %v3816_v21 = vld [vmem:[#allocation9 + $0xf0] sm:$0xff]  ;;  %p4313_p5 = pneg %p4312_p3 }
 0x28b   : > { %3982 = vmatpush.bf16.msra.mxu2 %v3787_v49  ;;  %2619 = vmatpush.bf16.msra.mxu0 %v3787_v49  ;;  %vm868_vm15 = vcmp.ne.s32.totalorder %v864_v24, %v4835_v59  ;;  %vm869_vm0 = vcmp.ne.s32.totalorder %v865_v25, %v4855_v10  ;;  %vm875_vm1 = vcmp.ne.s32.totalorder %v871_v57, %v4835_v59  ;;  %v920_v46 = vsel %vm4925_vm10, %v734_v11, 0  ;;  %v3825_v49 = vld [vmem:[#allocation9 + $0x138] sm:$0xff] }
 0x28c   : > { %v976_v38 = vrot.slane %v974_v20, 7  ;;  %v988_v34 = vor.u32 %v986_v8, %v4929_v31  ;;  %vm4943_vm3 = vmpackc.low %vm869_vm0, %vm868_vm15  ;;  %vm876_vm13 = vcmp.ne.s32.totalorder %v872_v32, %v4855_v10  ;;  %v3342_v50 = vor.u32 %v4917_v17, %v3339_v27  ;;  %v3833_v17 = vld [vmem:[#allocation9 + $0x178] sm:$0xff]  ;;  %v3808_v27 = vld [vmem:[#allocation9 + $0xb0] sm:$0xff]  ;;  %p4318_p12 = pnand %p4317_p9, %p4313_p5 }
 0x28d   : > { %vm4953_vm14 = vmpackc.low %vm876_vm13, %vm875_vm1  ;;  %v921_v56 = vsel %vm4943_vm3, %v735_v15, 0  ;;  %v933_v57 = vshrl.u32 %v920_v46, 16  ;;  %v802_v24 = vshrl.u32 %v4850_v3, 16  ;;  %v4979_v37 = vsel %vm4943_vm3, %v1569_v48, 0  ;;  %v3815_v46 = vld [vmem:[#allocation9 + $0xe8] sm:$0xff] }
 0x28e   : > { %3991 = vmatpush.bf16.msra.mxu3 %v4907_v61  ;;  %v979_v60 = vor.u32 %v977_v30, %v976_v38  ;;  %v981_v14 = vrot.slane %v976_v38, 4  ;;  %v922_v8 = vsel %vm4953_vm14, %v736_v36, 0  ;;  %v938_v11 = vshrl.u32 %v921_v56, 16  ;;  %2649 = vmatpush.bf16.msra.mxu1 %v4907_v61  ;;  %v3824_v38 = vld [vmem:[#allocation9 + $0x130] sm:$0xff]  ;;  %v3807_v48 = vld [vmem:[#allocation9 + $0xa8] sm:$0xff] }
 0x28f   : > { %3983 = vmatpush.bf16.msra.mxu2 %v3786_v28  ;;  %2620 = vmatpush.bf16.msra.mxu0 %v3786_v28  ;;  %v941_v15 = vshll.u32 %v921_v56, 16  ;;  %v947_v25 = vshrl.u32 %v922_v8, 16  ;;  %v950_v26 = vshll.u32 %v922_v8, 16  ;;  %v3260_v32 = vrot.slane %v933_v57, 11  ;;  %v4970_v28 = vld [vmem:[#allocation3 + $0xfc] sm:$0xf0] }
 0x290   : > { %v980_v20 = vsel %vm4934_vm11, %v972_v35, %v979_v60  ;;  %v989_v30 = vsel %vm4934_vm11, %v981_v14, %v988_v34  ;;  %v940_v36 = vrot.slane %v938_v11, 7  ;;  %v3270_v61 = vor.u32 %v3750_v58, %v3267_v16  ;;  %v3832_v60 = vld [vmem:[#allocation9 + $0x170] sm:$0xff]  ;;  %v1324_v11 = vld [vmem:[#allocation2 + $0xc] sm:$0x8] }
 0x291   : > { %2660 = vmatmul.bf16.vlgmr.msra.gmra.mxu3 %v3342_v50  ;;  %1020 = vst [vmem:[#allocation3 + $0x90] sm:$0xf] %v980_v20  ;;  %v4972_v3 = vrot.slane %v947_v25, 7  ;;  %v742_v50 = vld [vmem:[#allocation2 + $0x24] sm:$0xf]  ;;  %v844_v56 = vrot.slane %v842_v12, 4  ;;  %v913_v57 = vunpack.c.l.b16 %v4852_v9  ;;  %v914_v58 = vunpack.c.h.b16 %v4852_v9 }
 0x292   : > { %2700 = vmatpush.bf16.msrb.mxu3 %v3817_v18  ;;  %v4968_v18 = vld [vmem:[#allocation3 + $0xdc] sm:$0xf]  ;;  %1021 = vst [vmem:[#allocation3 + $0xb4] sm:$0xf] %v989_v30  ;;  %v943_v34 = vor.u32 %v941_v15, %v940_v36  ;;  %2758 = vmatpush.bf16.msrb.mxu1 %v3833_v17  ;;  %v804_v8 = vrot.slane %v802_v24, 4  ;;  %v3823_v12 = vld [vmem:[#allocation9 + $0x128] sm:$0xff] }
 0x293   : > { %2671 = vmatpush.bf16.msrb.mxu2 %v3809_v39  ;;  %2729 = vmatpush.bf16.msrb.mxu0 %v3825_v49  ;;  %v945_v39 = vrot.slane %v940_v36, 4  ;;  %v952_v14 = vor.u32 %v950_v26, %v4972_v3  ;;  %v3378_v49 = vor.u32 %v4968_v18, %v4970_v28  ;;  %v1325_v16 = vld [vmem:[#allocation2 + $0x10] sm:$0xf]  ;;  %v845_v17 = vor.u32 %v844_v56, %v4847_v2  ;;  %v4993_v15 = vld [vmem:[#allocation3 + $0x4c] sm:$0xf] }
 0x294   : > { %2650 = vmatmul.bf16.vlgmr.msra.gmra.mxu1 %v3270_v61  ;;  %v944_v51 = vsel %vm4934_vm11, %v3260_v32, %v943_v34  ;;  %vm917_vm5 = vcmp.ne.s32.totalorder %v913_v57, %v4835_v59  ;;  %v4995_v25 = vld [vmem:[#allocation3 + $0x6c] sm:$0xf0]  ;;  %vm918_vm6 = vcmp.ne.s32.totalorder %v914_v58, %v4855_v10  ;;  %v805_v24 = vor.u32 %v804_v8, %v4869_v13  ;;  %v3831_v2 = vld [vmem:[#allocation9 + $0x168] sm:$0xff]  ;;  %v3814_v13 = vld [vmem:[#allocation9 + $0xe0] sm:$0xff] }
 0x295   : > { %v953_v9 = vsel %vm4934_vm11, %v945_v39, %v952_v14  ;;  %1016 = vst [vmem:[#allocation3] sm:$0xf] %v944_v51  ;;  %v968_v26 = vshll.u32 %v4894_v54, 16  ;;  %v846_v20 = vrot.slane %v845_v17, 4  ;;  %vm5002_vm7 = vmpackc.low %vm918_vm6, %vm917_vm5  ;;  %v5672_v30 = vmov 0  ;;  %v3806_v14 = vld [vmem:[#allocation9 + $0xa0] sm:$0xff] }
 0x296   : > { %2701 = vmatpush.bf16.msrb.mxu3 %v3816_v21  ;;  %1017 = vst [vmem:[#allocation3 + $0x24] sm:$0xf] %v953_v9  ;;  %v5673_v30 = vsel %vm5002_vm7, 4294967295, %v5672_v30  ;;  %2759 = vmatpush.bf16.msrb.mxu1 %v3832_v60  ;;  %v1333_v36 = vsel %vm4925_vm10, %v1324_v11, 0  ;;  %v5011_v61 = vsel %vm4943_vm3, %v1325_v16, 0  ;;  %v5015_v54 = vsel %vm5002_vm7, %v742_v50, 0 }
 0x297   : > { %2672 = vmatpush.bf16.msrb.mxu2 %v3808_v27  ;;  %2730 = vmatpush.bf16.msrb.mxu0 %v3824_v38  ;;  %v1326_v27 = vld [vmem:[#allocation2 + $0x14] sm:$0xf]  ;;  %v806_v38 = vrot.slane %v805_v24, 4  ;;  %v5018_v34 = vor.u32 %v968_v26, %v4921_v22  ;;  %v3306_v39 = vor.u32 %v4993_v15, %v4995_v25  ;;  %v851_v40 = vsel %vm4843_vm12, %v846_v20, %v4825_v52  ;;  %v3813_v22 = vld [vmem:[#allocation9 + $0xd8] sm:$0xff]  ;;  %v3822_v58 = vld [vmem:[#allocation9 + $0x120] sm:$0xff] }
 0x298   : > { %v3337_v56 = vld [vmem:[#allocation3 + $0x90] sm:$0xf]  ;;  %v5028_v57 = vsel %vm4953_vm14, %v1326_v27, 0  ;;  %v5030_v50 = vshrl.u32 %v1333_v36, 16  ;;  %v906_v8 = vunpack.c.l.b16 %v851_v40  ;;  %v907_v11 = vunpack.c.h.b16 %v851_v40  ;;  %v741_v17 = vld [vmem:[#allocation2 + $0x20] sm:$0xf] }
 0x299   : > { %v3772_v60 = vld [vmem:[#allocation3 + $0xb0] sm:$0xf0]  ;;  %v1348_v16 = vshrl.u32 %v5011_v61, 16  ;;  %v1004_v9 = vshll.u32 %v5015_v54, 16  ;;  %v737_v24 = vld [vmem:[#allocation2 + $0x10] sm:$0xf] }
 0x29a   : > { %2702 = vmatpush.bf16.msrb.mxu3 %v3815_v46  ;;  %v1001_v46 = vshrl.u32 %v5015_v54, 16  ;;  %v3338_v51 = vor.u32 %v3772_v60, %v3337_v56  ;;  %2760 = vmatpush.bf16.msrb.mxu1 %v3831_v2  ;;  %v3830_v20 = vld [vmem:[#allocation9 + $0x160] sm:$0xff]  ;;  %vm910_vm9 = vcmp.ne.s32.totalorder %v906_v8, %v4835_v59  ;;  %vm911_vm15 = vcmp.ne.s32.totalorder %v907_v11, %v4855_v10  ;;  %v3805_v36 = vld [vmem:[#allocation9 + $0x98] sm:$0xff] }
 0x29b   : > { %2673 = vmatpush.bf16.msrb.mxu2 %v3807_v48  ;;  %2731 = vmatpush.bf16.msrb.mxu0 %v3823_v12  ;;  %v811_v48 = vsel %vm4843_vm12, %v806_v38, %v4825_v52  ;;  %v1350_v40 = vrot.slane %v1348_v16, 7  ;;  %v1434_v52 = vld [vmem:[#allocation2 + $0x10] sm:$0xf]  ;;  %v1435_v38 = vld [vmem:[#allocation2 + $0x14] sm:$0xf]  ;;  %vm5039_vm0 = vmpackc.low %vm911_vm15, %vm910_vm9  ;;  %v1351_v54 = vshll.u32 %v5011_v61, 16 }
 0x29c   : > { %v878_v26 = vunpack.c.l.b16 %v811_v48  ;;  %v879_v27 = vunpack.c.h.b16 %v811_v48  ;;  %v1003_v12 = vrot.slane %v1001_v46, 7  ;;  %2631 = vmatmul.bf16.vlgmr.msra.gmra.mxu2 %v3338_v51  ;;  %v3265_v56 = vld [vmem:[#allocation3] sm:$0xf]  ;;  %v3821_v2 = vld [vmem:[#allocation9 + $0x118] sm:$0xff]  ;;  %1442 = vst [vmem:[#allocation3 + $0x10] sm:$0xf] %v1434_v52 }
 0x29d   : > { %v3754_v46 = vld [vmem:[#allocation3 + $0x20] sm:$0xf0]  ;;  %v927_v8 = vsel %vm5039_vm0, %v741_v17, 0  ;;  %v5676_v11 = vmov 0  ;;  %v1355_v48 = vrot.slane %v1350_v40, 4  ;;  %v1357_v16 = vshrl.u32 %v5028_v57, 16 }
 0x29e   : > { %2703 = vmatpush.bf16.msrb.mxu3 %v3814_v13  ;;  %vm882_vm1 = vcmp.ne.s32.totalorder %v878_v26, %v4835_v59  ;;  %vm883_vm3 = vcmp.ne.s32.totalorder %v879_v27, %v4855_v10  ;;  %v3261_v13 = vrot.slane %v5030_v50, 11  ;;  %v1360_v51 = vshll.u32 %v5028_v57, 16  ;;  %2761 = vmatpush.bf16.msrb.mxu1 %v3830_v20  ;;  %1443 = vst [vmem:[#allocation3 + $0x34] sm:$0xf] %v1435_v38  ;;  %v3804_v20 = vld [vmem:[#allocation9 + $0x90] sm:$0xff] }
 0x29f   : > { %2674 = vmatpush.bf16.msrb.mxu2 %v3806_v14  ;;  %2732 = vmatpush.bf16.msrb.mxu0 %v3822_v58  ;;  %vm5049_vm13 = vmpackc.low %vm883_vm3, %vm882_vm1  ;;  %v3266_v26 = vor.u32 %v3754_v46, %v3265_v56  ;;  %v992_v50 = vshrl.u32 %v927_v8, 16  ;;  %v995_v27 = vshll.u32 %v927_v8, 16  ;;  %v3829_v14 = vld [vmem:[#allocation9 + $0x158] sm:$0xff]  ;;  %v3812_v58 = vld [vmem:[#allocation9 + $0xd0] sm:$0xff]  ;;  %v1353_v35 = vor.u32 %v1351_v54, %v1350_v40 }
 0x2a0   : > { %v5677_v11 = vsel %vm5049_vm13, 4294967295, %v5676_v11  ;;  %v923_v61 = vsel %vm5049_vm13, %v737_v24, 0  ;;  %v5057_v32 = vrot.slane %v1357_v16, 7  ;;  %v1006_v57 = vor.u32 %v1004_v9, %v1003_v12  ;;  %v1328_v24 = vld [vmem:[#allocation2 + $0x1c] sm:$0xf]  ;;  %v3810_v8 = vld [vmem:[#allocation9 + $0xc0] sm:$0xff] }
 0x2a1   : > { %v956_v17 = vshrl.u32 %v923_v61, 16  ;;  %v959_v52 = vshll.u32 %v923_v61, 16  ;;  %2621 = vmatmul.bf16.vlgmr.msra.gmra.mxu0 %v3266_v26  ;;  %v994_v21 = vrot.slane %v992_v50, 7  ;;  %v633_v56 = vand.u32 15, %v4860_v19  ;;  %2665 = vmatmul.bf16.gmra.mxu3 %v3378_v49  ;;  %v3811_v49 = vld [vmem:[#allocation9 + $0xc8] sm:$0xff] }
 0x2a2   : > { %2704 = vmatpush.bf16.msrb.mxu3 %v3813_v22  ;;  %v1084_v46 = vrot.slane %v792_v45, 7  ;;  %v1354_v40 = vsel %vm4934_vm11, %v3261_v13, %v1353_v35  ;;  %v1362_v38 = vor.u32 %v1360_v51, %v5057_v32  ;;  %v5070_v9 = vsel %vm5049_vm13, %v1327_v41, 0  ;;  %v3820_v45 = vld [vmem:[#allocation9 + $0x110] sm:$0xff]  ;;  %2762 = vmatpush.bf16.msrb.mxu1 %v3829_v14  ;;  %v1040_v16 = vld [vmem:[#allocation2 + $0x8] sm:$0xf] }
 0x2a3   : > { %2675 = vmatpush.bf16.msrb.mxu2 %v3805_v36  ;;  %v958_v22 = vrot.slane %v956_v17, 7  ;;  %v997_v19 = vor.u32 %v995_v27, %v994_v21  ;;  %v999_v12 = vrot.slane %v994_v21, 4  ;;  %2733 = vmatpush.bf16.msrb.mxu0 %v3821_v2  ;;  %1426 = vst [vmem:[#allocation3 + $0xc] sm:$0xf] %v1354_v40  ;;  %vm727_vm5 = vcmp.le.s32.totalorder %v633_v56, 14  ;;  %v3828_v21 = vld [vmem:[#allocation9 + $0x150] sm:$0xff] }
 0x2a4   : > { %v5074_v18 = vor.u32 %v1084_v46, %v788_v44  ;;  %2655 = vmatmul.bf16.gmra.mxu1 %v3306_v39  ;;  %v1363_v41 = vsel %vm4934_vm11, %v1355_v48, %v1362_v38  ;;  %vm1066_vm6 = vmpackc.low %vm727_vm5, %vm727_vm5  ;;  %v5083_v36 = vsel %vm4883_vm2, %v1328_v24, 0  ;;  %v5678_v42 = vrot.slane %v4929_v31, 4  ;;  %v3803_v48 = vld [vmem:[#allocation9 + $0x88] sm:$0xff]  ;;  %v1450_v14 = vld [vmem:[#allocation2 + $0x10] sm:$0xf] }
 0x2a5   : > { %v961_v28 = vor.u32 %v959_v52, %v958_v22  ;;  %v963_v35 = vrot.slane %v958_v22, 4  ;;  %v1007_v2 = vsel %vm4934_vm11, %v999_v12, %v1006_v57  ;;  %1427 = vst [vmem:[#allocation3 + $0x30] sm:$0xf] %v1363_v41  ;;  %v5679_v15 = vmov 0   ;;  %v3819_v50 = vld [vmem:[#allocation9 + $0x108] sm:$0xff]  ;;  %v3849_v57 = vld [vmem:[#allocation9 + $0x1f8] sm:$0xff] }
 0x2a6   : > { %2705 = vmatpush.bf16.msrb.mxu3 %v3812_v58  ;;  %v998_v44 = vsel %vm4934_vm11, %v5678_v42, %v997_v19  ;;  %v1074_v25 = vsel %vm1066_vm6, 65537, %v5679_v15  ;;  %v1152_v39 = vunpack.c.l.b16 %v5074_v18  ;;  %v5680_v13 = vrot.slane %v4972_v3, 4  ;;  %1023 = vst [vmem:[#allocation3 + $0xfc] sm:$0xf] %v1007_v2  ;;  %2763 = vmatpush.bf16.msrb.mxu1 %v3828_v21  ;;  %v3827_v61 = vld [vmem:[#allocation9 + $0x148] sm:$0xff] }
 0x2a7   : > { %1022 = vst [vmem:[#allocation3 + $0xd8] sm:$0xf] %v998_v44  ;;  %v971_v31 = vsel %vm4934_vm11, %v963_v35, %v5018_v34  ;;  %2676 = vmatpush.bf16.msrb.mxu2 %v3804_v20  ;;  %v1090_v51 = vshrl.u32 %v1074_v25, 16  ;;  %v1093_v26 = vshll.u32 %v1074_v25, 16  ;;  %2734 = vmatpush.bf16.msrb.mxu0 %v3820_v45  ;;  %v1153_v27 = vunpack.c.h.b16 %v5074_v18  ;;  %v1041_v21 = vld [vmem:[#allocation2 + $0xc] sm:$0xf] }
 0x2a8   : > { %v962_v54 = vsel %vm4934_vm11, %v5680_v13, %v961_v28  ;;  %vm5102_vm9 = vcmp.ne.s32.totalorder %v1152_v39, %v4835_v59  ;;  %v5106_v34 = vrot.slane %v1084_v46, 4  ;;  %v1366_v17 = vshrl.u32 %v5070_v9, 16  ;;  %1019 = vst [vmem:[#allocation3 + $0x6c] sm:$0xf] %v971_v31  ;;  %v3802_v46 = vld [vmem:[#allocation9 + $0x80] sm:$0xff]  ;;  %v3841_v25 = vld [vmem:[#allocation9 + $0x1b8] sm:$0xff] }
 0x2a9   : > { %1018 = vst [vmem:[#allocation3 + $0x48] sm:$0xf] %v962_v54  ;;  %v1092_v58 = vrot.slane %v1090_v51, 7  ;;  %v1375_v52 = vshrl.u32 %v5083_v36, 16  ;;  %vm1157_vm15 = vcmp.ne.s32.totalorder %v1153_v27, %v4855_v10  ;;  %v1364_v56 = vrot.slane %v5057_v32, 4  ;;  %v3826_v39 = vld [vmem:[#allocation9 + $0x140] sm:$0xff] }
 0x2aa   : > { %2706 = vmatpush.bf16.msrb.mxu3 %v3811_v49  ;;  %v1369_v24 = vshll.u32 %v5070_v9, 16  ;;  %v5114_v22 = vadd.s32 24, %v4786_v29  ;;  %v5116_v20 = vld [vmem:[#allocation3 + $0xc] sm:$0xf]  ;;  %vm5120_vm1 = vmpackc.low %vm1157_vm15, %vm5102_vm9  ;;  %v5124_v12 = vrot.slane %v1366_v17, 7  ;;  %v1378_v32 = vshll.u32 %v5083_v36, 16  ;;  %2764 = vmatpush.bf16.msrb.mxu1 %v3827_v61 }
 0x2ab   : > { %2677 = vmatpush.bf16.msrb.mxu2 %v3803_v48  ;;  %v1095_v40 = vor.u32 %v1093_v26, %v1092_v58  ;;  %v1097_v38 = vrot.slane %v1092_v58, 4  ;;  %2735 = vmatpush.bf16.msrb.mxu0 %v3819_v50  ;;  %v3818_v9 = vld [vmem:[#allocation9 + $0x100] sm:$0xff]  ;;  %v1215_v45 = vsel %vm5120_vm1, %v1040_v16, 0  ;;  %v5129_v28 = vrot.slane %v1375_v52, 7  ;;  %v1042_v31 = vld [vmem:[#allocation2 + $0x10] sm:$0xf] }
 0x2ac   : > { %v5133_v35 = vsel %vm5120_vm1, %v1450_v14, 0  ;;  %v647_v49 = vand.u32 15, %v5114_v22  ;;  %v3275_v41 = vld [vmem:[#allocation3 + $0x2c] sm:$0xf0]  ;;  %v1225_v44 = vshrl.u32 %v1215_v45, 16  ;;  %v1228_v2 = vshll.u32 %v1215_v45, 16 }
 0x2ad   : > { %v1096_v36 = vsel %vm4934_vm11, %v5106_v34, %v1095_v40  ;;  %v1105_v42 = vsel %vm4934_vm11, %v1097_v38, %v5074_v18  ;;  %v3278_v54 = vor.u32 %v5116_v20, %v3275_v41  ;;  %v3848_v51 = vld [vmem:[#allocation9 + $0x1f0] sm:$0xff]  ;;  %v3781_v50 = vld [vmem:[#allocation3 + $0xf8] sm:$0xf0]  ;;  %v1371_v14 = vor.u32 %v1369_v24, %v5124_v12  ;;  %v1452_v20 = vld [vmem:[#allocation2 + $0x18] sm:$0xf] }
 0x2ae   : > { %2707 = vmatpush.bf16.msrb.mxu3 %v3810_v8  ;;  %v3373_v13 = vld [vmem:[#allocation3 + $0xd8] sm:$0xf]  ;;  %v1159_v48 = vunpack.c.l.b16 %v1096_v36  ;;  %v1160_v8 = vunpack.c.h.b16 %v1096_v36  ;;  %v1166_v16 = vunpack.c.l.b16 %v1105_v42  ;;  %v1451_v26 = vld [vmem:[#allocation2 + $0x14] sm:$0xf]  ;;  %v1167_v27 = vunpack.c.h.b16 %v1105_v42  ;;  %2765 = vmatpush.bf16.msrb.mxu1 %v3826_v39  ;;  %v3847_v22 = vld [vmem:[#allocation9 + $0x1e8] sm:$0xff] }
 0x2af   : > { %2678 = vmatpush.bf16.msrb.mxu2 %v3802_v46  ;;  %v1227_v3 = vrot.slane %v1225_v44, 4  ;;  %v1230_v61 = vrot.slane %v1228_v2, 5  ;;  %v3857_v58 = vld [vmem:[#allocation9 + $0x238] sm:$0xff]  ;;  %v3374_v17 = vor.u32 %v3781_v50, %v3373_v13  ;;  %2736 = vmatpush.bf16.msrb.mxu0 %v3818_v9  ;;  %v3763_v40 = vld [vmem:[#allocation3 + $0x68] sm:$0xf0]  ;;  %v1372_v38 = vsel %vm4934_vm11, %v1364_v56, %v1371_v14 }
 0x2b0   : > { %v3301_v52 = vld [vmem:[#allocation3 + $0x48] sm:$0xf]  ;;  %vm1163_vm3 = vcmp.ne.s32.totalorder %v1159_v48, %v4835_v59  ;;  %vm1164_vm5 = vcmp.ne.s32.totalorder %v1160_v8, %v4855_v10  ;;  %vm1170_vm6 = vcmp.ne.s32.totalorder %v1166_v16, %v4835_v59  ;;  %vm1171_vm15 = vcmp.ne.s32.totalorder %v1167_v27, %v4855_v10  ;;  %v1436_v45 = vld [vmem:[#allocation2 + $0x18] sm:$0xf]  ;;  %1428 = vst [vmem:[#allocation3 + $0x54] sm:$0xf] %v1372_v38 }
 0x2b1   : > { %vm5147_vm9 = vmpackc.low %vm1164_vm5, %vm1163_vm3  ;;  %v1231_v24 = vor.u32 %v1230_v61, %v1227_v3  ;;  %v1373_v9 = vrot.slane %v5124_v12, 4  ;;  %2636 = vmatmul.bf16.gmra.mxu2 %v3374_v17  ;;  %v3302_v41 = vor.u32 %v3763_v40, %v3301_v52  ;;  %v1380_v44 = vor.u32 %v1378_v32, %v5129_v28  ;;  %v1437_v56 = vld [vmem:[#allocation2 + $0x1c] sm:$0xf]  ;;  %2708 = vmatmul.bf16.vlgmr.msrb.gmra.mxu3 %v3278_v54  ;;  %v1329_v61 = vld [vmem:[#allocation2 + $0x20] sm:$0xf] }
 0x2b2   : > { %2816 = vmatpush.bf16.msra.mxu3 %v3849_v57  ;;  %v3840_v57 = vld [vmem:[#allocation9 + $0x1b0] sm:$0xff]  ;;  %vm5155_vm2 = vmpackc.low %vm1171_vm15, %vm1170_vm6  ;;  %v1216_v42 = vsel %vm5147_vm9, %v1041_v21, 0  ;;  %v1460_v2 = vsel %vm5147_vm9, %v1451_v26, 0  ;;  %1444 = vst [vmem:[#allocation3 + $0x58] sm:$0xf] %v1436_v45  ;;  %v1469_v8 = vshrl.u32 %v5133_v35, 16 }
 0x2b3   : > { %2787 = vmatpush.bf16.msra.mxu2 %v3841_v25  ;;  %v1217_v12 = vsel %vm5155_vm2, %v1042_v31, 0  ;;  %v1232_v25 = vrot.slane %v1231_v24, 4  ;;  %v1234_v39 = vshll.u32 %v1216_v42, 16  ;;  %v1238_v13 = vshrl.u32 %v1216_v42, 16  ;;  %2845 = vmatpush.bf16.msra.mxu0 %v3857_v58  ;;  %1445 = vst [vmem:[#allocation3 + $0x7c] sm:$0xf] %v1437_v56 }
 0x2b4   : > { %2626 = vmatmul.bf16.gmra.mxu0 %v3302_v41  ;;  %v1244_v48 = vshll.u32 %v1217_v12, 16  ;;  %v1381_v32 = vsel %vm4934_vm11, %v1373_v9, %v1380_v44  ;;  %v5170_v21 = vsel %vm5155_vm2, %v1452_v20, 0  ;;  %v1472_v31 = vshll.u32 %v5133_v35, 16  ;;  %v1330_v20 = vld [vmem:[#allocation2 + $0x24] sm:$0xf] }
 0x2b5   : > { %v1236_v54 = vrot.slane %v1234_v39, 5  ;;  %v1240_v16 = vrot.slane %v1238_v13, 4  ;;  %1429 = vst [vmem:[#allocation3 + $0x78] sm:$0xf] %v1381_v32  ;;  %v1471_v50 = vrot.slane %v1469_v8, 4  ;;  %v1482_v27 = vshrl.u32 %v1460_v2, 16 }
 0x2b6   : > { %2817 = vmatpush.bf16.msra.mxu3 %v3848_v51  ;;  %v1478_v51 = vshll.u32 %v1460_v2, 16  ;;  %v1246_v26 = vrot.slane %v1244_v48, 5  ;;  %v1488_v3 = vshll.u32 %v5170_v21, 16  ;;  %v1474_v17 = vrot.slane %v1472_v31, 5  ;;  %v5177_v40 = vld [vmem:[#allocation3 + $0x10] sm:$0xf] }
 0x2b7   : > { %2788 = vmatpush.bf16.msra.mxu2 %v3840_v57  ;;  %v1237_v14 = vsel %vm4843_vm12, %v1232_v25, %v1236_v54  ;;  %v1241_v58 = vor.u32 %v1240_v16, %v1236_v54  ;;  %v1484_v57 = vrot.slane %v1482_v27, 4  ;;  %vm729_vm3 = vcmp.le.s32.totalorder %v647_v49, 14  ;;  %v5182_v9 = vld [vmem:[#allocation3 + $0x30] sm:$0xf0]  ;;  %v3839_v25 = vld [vmem:[#allocation9 + $0x1a8] sm:$0xff] }
 0x2b8   : > { %v1480_v52 = vrot.slane %v1478_v51, 5  ;;  %1316 = vst [vmem:[#allocation3 + $0x8] sm:$0xf] %v1237_v14  ;;  %v1248_v35 = vshrl.u32 %v1217_v12, 16  ;;  %v619_v24 = vadd.s32 40, %v4786_v29  ;;  %v1475_v45 = vor.u32 %v1474_v17, %v1471_v50  ;;  %vm1068_vm5 = vmpackc.low %vm729_vm3, %vm729_vm3  ;;  %v3856_v8 = vld [vmem:[#allocation9 + $0x230] sm:$0xff] }
 0x2b9   : > { %v1242_v38 = vrot.slane %v1241_v58, 4  ;;  %v5184_v41 = vrot.slane %v1488_v3, 5  ;;  %v1338_v42 = vsel %vm4909_vm8, %v1329_v61, 0  ;;  %v1076_v2 = vsel %vm1068_vm5, 65537, %v5679_v15  ;;  %v3760_v39 = vld [vmem:[#allocation3 + $0x54] sm:$0xf]  ;;  %2846 = vmatpush.bf16.msra.mxu0 %v3856_v8 }
 0x2ba   : > { %v1485_v44 = vor.u32 %v1484_v57, %v1480_v52  ;;  %v1250_v56 = vrot.slane %v1248_v35, 4  ;;  %v1339_v49 = vsel %vm4888_vm4, %v1330_v20, 0  ;;  %v1476_v13 = vrot.slane %v1475_v45, 4  ;;  %2818 = vmatpush.bf16.msra.mxu3 %v3847_v22  ;;  %v3838_v51 = vld [vmem:[#allocation9 + $0x1a0] sm:$0xff]  ;;  %v3855_v14 = vld [vmem:[#allocation9 + $0x228] sm:$0xff] }
 0x2bb   : > { %v1247_v12 = vsel %vm4843_vm12, %v1242_v38, %v1246_v26  ;;  %v1108_v48 = vshrl.u32 %v1076_v2, 16  ;;  %v1111_v32 = vshll.u32 %v1076_v2, 16  ;;  %2789 = vmatpush.bf16.msra.mxu2 %v3839_v25  ;;  %v3282_v50 = vor.u32 %v5182_v9, %v5177_v40  ;;  %v3846_v61 = vld [vmem:[#allocation9 + $0x1e0] sm:$0xff] }
 0x2bc   : > { %1317 = vst [vmem:[#allocation3 + $0x2c] sm:$0xf] %v1247_v12  ;;  %v3311_v54 = vld [vmem:[#allocation3 + $0x74] sm:$0xf0]  ;;  %v1486_v16 = vrot.slane %v1485_v44, 4  ;;  %v1251_v31 = vor.u32 %v1250_v56, %v1246_v26  ;;  %v1481_v27 = vsel %vm4843_vm12, %v1476_v13, %v1480_v52  ;;  %v661_v58 = vand.u32 15, %v619_v24 }
 0x2bd   : > { %v1110_v3 = vrot.slane %v1108_v48, 7  ;;  %v3314_v17 = vor.u32 %v3760_v39, %v3311_v54  ;;  %1560 = vst [vmem:[#allocation3 + $0x14] sm:$0xf] %v1481_v27  ;;  %v1382_v26 = vrot.slane %v5129_v28, 4  ;;  %v1384_v57 = vshrl.u32 %v1338_v42, 16  ;;  %2847 = vmatpush.bf16.msra.mxu0 %v3855_v14 }
 0x2be   : > { %v1491_v20 = vsel %vm4843_vm12, %v1486_v16, %v5184_v41  ;;  %v1387_v38 = vshll.u32 %v1338_v42, 16  ;;  %v1393_v9 = vshrl.u32 %v1339_v49, 16  ;;  %v5201_v52 = vrot.slane %v1251_v31, 4  ;;  %2819 = vmatpush.bf16.msra.mxu3 %v3846_v61  ;;  %v1043_v56 = vld [vmem:[#allocation2 + $0x14] sm:$0xf] }
 0x2bf   : > { %1561 = vst [vmem:[#allocation3 + $0x38] sm:$0xf] %v1491_v20  ;;  %v1113_v35 = vor.u32 %v1111_v32, %v1110_v3  ;;  %v1115_v40 = vrot.slane %v1110_v3, 4  ;;  %2790 = vmatpush.bf16.msra.mxu2 %v3838_v51  ;;  %v1386_v45 = vrot.slane %v1384_v57, 7  ;;  %v1396_v44 = vshll.u32 %v1339_v49, 16 }
 0x2c0   : > { %v1492_v24 = vshrl.u32 %v5170_v21, 16  ;;  %v3273_v2 = vld [vmem:[#allocation3 + $0x8] sm:$0xf]  ;;  %v5210_v42 = vrot.slane %v1393_v9, 7  ;;  %vm5212_vm6 = vcmp.le.s32.totalorder %v661_v58, 14 }
 0x2c1   : > { %v1114_v28 = vsel %vm4934_vm11, %v5106_v34, %v1113_v35  ;;  %v1123_v25 = vsel %vm4934_vm11, %v1115_v40, %v5074_v18  ;;  %v1453_v13 = vld [vmem:[#allocation2 + $0x1c] sm:$0xf]  ;;  %v1438_v48 = vld [vmem:[#allocation2 + $0x20] sm:$0xf]  ;;  %v1439_v32 = vld [vmem:[#allocation2 + $0x24] sm:$0xf]  ;;  %2713 = vmatmul.bf16.gmra.mxu3 %v3314_v17  ;;  %v1389_v54 = vor.u32 %v1387_v38, %v1386_v45 }
 0x2c2   : > { %v1173_v49 = vunpack.c.l.b16 %v1114_v28  ;;  %v1174_v12 = vunpack.c.h.b16 %v1114_v28  ;;  %v1180_v21 = vunpack.c.l.b16 %v1123_v25  ;;  %v1181_v39 = vunpack.c.h.b16 %v1123_v25  ;;  %1446 = vst [vmem:[#allocation3 + $0xa0] sm:$0xf] %v1438_v48  ;;  %v1044_v3 = vld [vmem:[#allocation2 + $0x18] sm:$0xf]  ;;  %v1454_v17 = vld [vmem:[#allocation2 + $0x20] sm:$0xf] }
 0x2c3   : > { %v3755_v8 = vld [vmem:[#allocation3 + $0x28] sm:$0xf0]  ;;  %v1391_v16 = vrot.slane %v1386_v45, 4  ;;  %v1398_v31 = vor.u32 %v1396_v44, %v5210_v42  ;;  %v1494_v51 = vrot.slane %v1492_v24, 4  ;;  %v1390_v58 = vsel %vm4934_vm11, %v1382_v26, %v1389_v54  ;;  %1447 = vst [vmem:[#allocation3 + $0xc4] sm:$0xf] %v1439_v32 }
 0x2c4   : > { %v3274_v27 = vor.u32 %v3755_v8, %v3273_v2  ;;  %2737 = vmatmul.bf16.vlgmr.msrb.gmra.mxu0 %v3282_v50  ;;  %vm1177_vm15 = vcmp.ne.s32.totalorder %v1173_v49, %v4835_v59  ;;  %vm1178_vm3 = vcmp.ne.s32.totalorder %v1174_v12, %v4855_v10  ;;  %vm1184_vm5 = vcmp.ne.s32.totalorder %v1180_v21, %v4835_v59  ;;  %v3752_v61 = vld [vmem:[#allocation3 + $0x14] sm:$0xf]  ;;  %v5247_v49 = vld [vmem:[#allocation3 + $0x58] sm:$0xf]  ;;  %v5249_v12 = vld [vmem:[#allocation3 + $0x78] sm:$0xf0] }
 0x2c5   : > { %vm5220_vm4 = vmpackc.low %vm1178_vm3, %vm1177_vm15  ;;  %vm1185_vm8 = vcmp.ne.s32.totalorder %v1181_v39, %v4855_v10  ;;  %v1399_v50 = vsel %vm4934_vm11, %v1391_v16, %v1398_v31  ;;  %v1495_v20 = vor.u32 %v1494_v51, %v5184_v41  ;;  %1430 = vst [vmem:[#allocation3 + $0x9c] sm:$0xf] %v1390_v58  ;;  %v1332_v8 = vld [vmem:[#allocation2 + $0x2c] sm:$0xf]  ;;  %v5256_v54 = vadd.s32 56, %v4786_v29  ;;  %v3854_v58 = vld [vmem:[#allocation9 + $0x220] sm:$0xff] }
 0x2c6   : > { %2679 = vmatmul.bf16.vlgmr.msrb.gmra.mxu2 %v3274_v27  ;;  %v3283_v57 = vld [vmem:[#allocation3 + $0x34] sm:$0xf0]  ;;  %vm5230_vm13 = vmpackc.low %vm1185_vm8, %vm1184_vm5  ;;  %v1218_v40 = vsel %vm5220_vm4, %v1043_v56, 0  ;;  %v1462_v26 = vsel %vm5220_vm4, %v1453_v13, 0  ;;  %1431 = vst [vmem:[#allocation3 + $0xc0] sm:$0xf] %v1399_v50  ;;  %2848 = vmatpush.bf16.msra.mxu0 %v3854_v58 }
 0x2c7   : > { %v3286_v38 = vor.u32 %v3752_v61, %v3283_v57  ;;  %v1219_v9 = vsel %vm5230_vm13, %v1044_v3, 0  ;;  %v1254_v45 = vshll.u32 %v1218_v40, 16  ;;  %v1258_v41 = vshrl.u32 %v1218_v40, 16  ;;  %vm1070_vm8 = vmpackc.low %vm5212_vm6, %vm5212_vm6  ;;  %v1331_v13 = vld [vmem:[#allocation2 + $0x28] sm:$0xf]  ;;  %v3837_v3 = vld [vmem:[#allocation9 + $0x198] sm:$0xff] }
 0x2c8   : > { %v1264_v44 = vshll.u32 %v1219_v9, 16  ;;  %v1268_v24 = vshrl.u32 %v1219_v9, 16  ;;  %v5245_v2 = vsel %vm5230_vm13, %v1454_v17, 0  ;;  %v1496_v56 = vrot.slane %v1495_v20, 4  ;;  %v3845_v61 = vld [vmem:[#allocation9 + $0x1d8] sm:$0xff]  ;;  %2791 = vmatpush.bf16.msra.mxu2 %v3837_v3 }
 0x2c9   : > { %2766 = vmatmul.bf16.vlgmr.msrb.gmra.mxu1 %v3286_v38  ;;  %v1256_v28 = vrot.slane %v1254_v45, 5  ;;  %v1260_v25 = vrot.slane %v1258_v41, 4  ;;  %v1498_v21 = vshll.u32 %v1462_v26, 16  ;;  %v1502_v39 = vshrl.u32 %v1462_v26, 16  ;;  %2820 = vmatpush.bf16.msra.mxu3 %v3845_v61 }
 0x2ca   : > { %v5251_v22 = vrot.slane %v1264_v44, 5  ;;  %v1508_v48 = vshll.u32 %v5245_v2, 16  ;;  %v1078_v32 = vsel %vm1070_vm8, 65537, %v5679_v15  ;;  %v1512_v50 = vshrl.u32 %v5245_v2, 16 }
 0x2cb   : > { %v1257_v16 = vsel %vm4843_vm12, %v5201_v52, %v1256_v28  ;;  %v1261_v31 = vor.u32 %v1260_v25, %v1256_v28  ;;  %v1500_v51 = vrot.slane %v1498_v21, 5  ;;  %v1504_v27 = vrot.slane %v1502_v39, 4  ;;  %v3836_v52 = vld [vmem:[#allocation9 + $0x190] sm:$0xff]  ;;  %v3853_v39 = vld [vmem:[#allocation9 + $0x218] sm:$0xff] }
 0x2cc   : > { %1318 = vst [vmem:[#allocation3 + $0x50] sm:$0xf] %v1257_v16  ;;  %v1126_v17 = vshrl.u32 %v1078_v32, 16  ;;  %v1129_v20 = vshll.u32 %v1078_v32, 16  ;;  %v1270_v57 = vrot.slane %v1268_v24, 4  ;;  %v5264_v9 = vrot.slane %v1508_v48, 5  ;;  %2792 = vmatpush.bf16.msra.mxu2 %v3836_v52  ;;  %2849 = vmatpush.bf16.msra.mxu0 %v3853_v39 }
 0x2cd   : > { %v1262_v40 = vrot.slane %v1261_v31, 4  ;;  %v3769_v26 = vld [vmem:[#allocation3 + $0x9c] sm:$0xf]  ;;  %v1501_v29 = vsel %vm4843_vm12, %v1496_v56, %v1500_v51  ;;  %v1505_v38 = vor.u32 %v1504_v27, %v1500_v51  ;;  %v3318_v45 = vor.u32 %v5249_v12, %v5247_v49  ;;  %v3347_v41 = vld [vmem:[#allocation3 + $0xbc] sm:$0xf0]  ;;  %v3844_v21 = vld [vmem:[#allocation9 + $0x1d0] sm:$0xff] }
 0x2ce   : > { %1562 = vst [vmem:[#allocation3 + $0x5c] sm:$0xf] %v1501_v29  ;;  %v1128_v44 = vrot.slane %v1126_v17, 7  ;;  %v1340_v24 = vsel %vm5039_vm0, %v1331_v13, 0  ;;  %v3350_v56 = vor.u32 %v3769_v26, %v3347_v41  ;;  %v1341_v25 = vsel %vm5002_vm7, %v1332_v8, 0  ;;  %2821 = vmatpush.bf16.msra.mxu3 %v3844_v21 }
 0x2cf   : > { %v1267_v2 = vsel %vm4843_vm12, %v1262_v40, %v5251_v22  ;;  %v1506_v28 = vrot.slane %v1505_v38, 4  ;;  %v1271_v48 = vor.u32 %v1270_v57, %v5251_v22  ;;  %v1400_v32 = vrot.slane %v5210_v42, 4  ;;  %v1045_v8 = vld [vmem:[#allocation2 + $0x1c] sm:$0xf]  ;;  %v1455_v57 = vld [vmem:[#allocation2 + $0x24] sm:$0xf] }
 0x2d0   : > { %1319 = vst [vmem:[#allocation3 + $0x74] sm:$0xf] %v1267_v2  ;;  %v1131_v49 = vor.u32 %v1129_v20, %v1128_v44  ;;  %v1133_v12 = vrot.slane %v1128_v44, 4  ;;  %v1402_v16 = vshrl.u32 %v1340_v24, 16  ;;  %v1405_v31 = vshll.u32 %v1340_v24, 16 }
 0x2d1   : > { %v1511_v13 = vsel %vm4843_vm12, %v1506_v28, %v5264_v9  ;;  %v1411_v51 = vshrl.u32 %v1341_v25, 16  ;;  %v1414_v42 = vshll.u32 %v1341_v25, 16  ;;  %v1514_v3 = vrot.slane %v1512_v50, 4  ;;  %2718 = vmatmul.bf16.gmra.mxu3 %v3350_v56  ;;  %v1440_v40 = vld [vmem:[#allocation2 + $0x28] sm:$0xf] }
 0x2d2   : > { %1563 = vst [vmem:[#allocation3 + $0x80] sm:$0xf] %v1511_v13  ;;  %v1132_v27 = vsel %vm4934_vm11, %v5106_v34, %v1131_v49  ;;  %v1141_v22 = vsel %vm4934_vm11, %v1133_v12, %v5074_v18  ;;  %v1441_v26 = vld [vmem:[#allocation2 + $0x2c] sm:$0xf]  ;;  %v1404_v29 = vrot.slane %v1402_v16, 7  ;;  %v675_v41 = vand.u32 15, %v5256_v54 }
 0x2d3   : > { %v1187_v61 = vunpack.c.l.b16 %v1132_v27  ;;  %v1188_v58 = vunpack.c.h.b16 %v1132_v27  ;;  %v1194_v17 = vunpack.c.l.b16 %v1141_v22  ;;  %v1195_v20 = vunpack.c.h.b16 %v1141_v22  ;;  %1448 = vst [vmem:[#allocation3 + $0xe8] sm:$0xf] %v1440_v40  ;;  %v3309_v18 = vld [vmem:[#allocation3 + $0x50] sm:$0xf]  ;;  %v1046_v44 = vld [vmem:[#allocation2 + $0x20] sm:$0xf] }
 0x2d4   : > { %2742 = vmatmul.bf16.gmra.mxu0 %v3318_v45  ;;  %v1413_v38 = vrot.slane %v1411_v51, 7  ;;  %v1515_v52 = vor.u32 %v1514_v3, %v5264_v9  ;;  %1449 = vst [vmem:[#allocation3 + $0x10c] sm:$0xf] %v1441_v26  ;;  %v1272_v9 = vrot.slane %v1271_v48, 4  ;;  %v1407_v24 = vor.u32 %v1405_v31, %v1404_v29  ;;  %v1456_v56 = vld [vmem:[#allocation2 + $0x28] sm:$0xf] }
 0x2d5   : > { %vm1191_vm6 = vcmp.ne.s32.totalorder %v1187_v61, %v4835_v59  ;;  %vm1192_vm15 = vcmp.ne.s32.totalorder %v1188_v58, %v4855_v10  ;;  %vm1198_vm3 = vcmp.ne.s32.totalorder %v1194_v17, %v4835_v59  ;;  %vm1199_vm5 = vcmp.ne.s32.totalorder %v1195_v20, %v4855_v10  ;;  %v3761_v50 = vld [vmem:[#allocation3 + $0x5c] sm:$0xf] }
 0x2d6   : > { %vm5292_vm8 = vmpackc.low %vm1192_vm15, %vm1191_vm6  ;;  %v1409_v54 = vrot.slane %v1404_v29, 4  ;;  %v1416_v2 = vor.u32 %v1414_v42, %v1413_v38  ;;  %v1516_v49 = vrot.slane %v1515_v52, 4  ;;  %vm5304_vm6 = vcmp.le.s32.totalorder %v675_v41, 14  ;;  %v3774_v52 = vld [vmem:[#allocation3 + $0xc0] sm:$0xf0] }
 0x2d7   : > { %v3764_v28 = vld [vmem:[#allocation3 + $0x70] sm:$0xf0]  ;;  %vm5296_vm7 = vmpackc.low %vm1199_vm5, %vm1198_vm3  ;;  %v1220_v21 = vsel %vm5292_vm8, %v1045_v8, 0  ;;  %v1464_v39 = vsel %vm5292_vm8, %v1455_v57, 0  ;;  %v1408_v8 = vsel %vm4934_vm11, %v1400_v32, %v1407_v24  ;;  %v5319_v57 = vld [vmem:[#allocation3 + $0xa0] sm:$0xf] }
 0x2d8   : > { %v3310_v48 = vor.u32 %v3764_v28, %v3309_v18  ;;  %v1221_v13 = vsel %vm5296_vm7, %v1046_v44, 0  ;;  %v1274_v16 = vshll.u32 %v1220_v21, 16  ;;  %v1278_v31 = vshrl.u32 %v1220_v21, 16  ;;  %vm1072_vm15 = vmpackc.low %vm5304_vm6, %vm5304_vm6  ;;  %1432 = vst [vmem:[#allocation3 + $0xe4] sm:$0xf] %v1408_v8  ;;  %v3835_v44 = vld [vmem:[#allocation9 + $0x188] sm:$0xff] }
 0x2d9   : > { %v3319_v51 = vld [vmem:[#allocation3 + $0x7c] sm:$0xf0]  ;;  %v1284_v27 = vshll.u32 %v1221_v13, 16  ;;  %v1288_v22 = vshrl.u32 %v1221_v13, 16  ;;  %v1417_v42 = vsel %vm4934_vm11, %v1409_v54, %v1416_v2  ;;  %v1465_v17 = vsel %vm5296_vm7, %v1456_v56, 0  ;;  %2793 = vmatpush.bf16.msra.mxu2 %v3835_v44  ;;  %v3852_v13 = vld [vmem:[#allocation9 + $0x210] sm:$0xff] }
 0x2da   : > { %2684 = vmatmul.bf16.gmra.mxu2 %v3310_v48  ;;  %v3322_v3 = vor.u32 %v3761_v50, %v3319_v51  ;;  %v1276_v61 = vrot.slane %v1274_v16, 5  ;;  %v1280_v58 = vrot.slane %v1278_v31, 4  ;;  %1433 = vst [vmem:[#allocation3 + $0x108] sm:$0xf] %v1417_v42  ;;  %v1518_v32 = vshll.u32 %v1464_v39, 16  ;;  %v3843_v50 = vld [vmem:[#allocation9 + $0x1c8] sm:$0xff]  ;;  %2850 = vmatpush.bf16.msra.mxu0 %v3852_v13 }
 0x2db   : > { %v1286_v20 = vrot.slane %v1284_v27, 5  ;;  %v1522_v40 = vshrl.u32 %v1464_v39, 16  ;;  %v1528_v26 = vshll.u32 %v1465_v17, 16  ;;  %v1532_v41 = vshrl.u32 %v1465_v17, 16  ;;  %v1570_v24 = vld [vmem:[#allocation2 + $0x1c] sm:$0xf]  ;;  %2822 = vmatpush.bf16.msra.mxu3 %v3843_v50 }
 0x2dc   : > { %2771 = vmatmul.bf16.gmra.mxu1 %v3322_v3  ;;  %v1277_v29 = vsel %vm4843_vm12, %v1272_v9, %v1276_v61  ;;  %v1281_v38 = vor.u32 %v1280_v58, %v1276_v61  ;;  %v1080_v18 = vsel %vm1072_vm15, 65537, %v5679_v15  ;;  %v5701_v54 = vsel %vm4925_vm10, %v4950_v47, 0  ;;  %v5335_v21 = vld [vmem:[#allocation3 + $0xe8] sm:$0xf]  ;;  %v5337_v15 = vld [vmem:[#allocation3 + $0x108] sm:$0xf0] }
 0x2dd   : > { %v5333_v2 = vshrl.u32 %v5701_v54, 16  ;;  %1320 = vst [vmem:[#allocation3 + $0x98] sm:$0xf] %v1277_v29  ;;  %v1520_v9 = vrot.slane %v1518_v32, 5  ;;  %v1524_v56 = vrot.slane %v1522_v40, 4  ;;  %v1144_v28 = vshrl.u32 %v1080_v18, 16 }
 0x2de   : > { %v1282_v39 = vrot.slane %v1281_v38, 4  ;;  %v1147_v48 = vshll.u32 %v1080_v18, 16  ;;  %v1290_v12 = vrot.slane %v1288_v22, 4  ;;  %v1530_v16 = vrot.slane %v1528_v26, 5  ;;  %v3842_v51 = vld [vmem:[#allocation9 + $0x1c0] sm:$0xff]  ;;  %v3851_v58 = vld [vmem:[#allocation9 + $0x208] sm:$0xff] }
 0x2df   : > { %v1521_v23 = vsel %vm4843_vm12, %v1516_v49, %v1520_v9  ;;  %v1525_v47 = vor.u32 %v1524_v56, %v1520_v9  ;;  %v1146_v31 = vrot.slane %v1144_v28, 7  ;;  %v3834_v27 = vld [vmem:[#allocation9 + $0x180] sm:$0xff]  ;;  %v1678_v8 = vld [vmem:[#allocation2 + $0x18] sm:$0xf]  ;;  %v3354_v3 = vor.u32 %v3774_v52, %v5319_v57  ;;  %v1679_v61 = vld [vmem:[#allocation2 + $0x1c] sm:$0xf]  ;;  %2823 = vmatpush.bf16.msra.mxu3 %v3842_v51  ;;  %2851 = vmatpush.bf16.msra.mxu0 %v3851_v58 }
 0x2e0   : > { %v1287_v42 = vsel %vm4843_vm12, %v1282_v39, %v1286_v20  ;;  %1564 = vst [vmem:[#allocation3 + $0xa4] sm:$0xf] %v1521_v23  ;;  %v1291_v22 = vor.u32 %v1290_v12, %v1286_v20  ;;  %v1534_v17 = vrot.slane %v1532_v41, 4  ;;  %v3778_v32 = vld [vmem:[#allocation3 + $0xe4] sm:$0xf]  ;;  %v5346_v29 = vsel %vm4953_vm14, %v1570_v24, 0  ;;  %2794 = vmatpush.bf16.msra.mxu2 %v3834_v27 }
 0x2e1   : > { %1321 = vst [vmem:[#allocation3 + $0xbc] sm:$0xf] %v1287_v42  ;;  %v1526_v49 = vrot.slane %v1525_v47, 4  ;;  %v1149_v40 = vor.u32 %v1147_v48, %v1146_v31  ;;  %v1151_v26 = vrot.slane %v1146_v31, 4  ;;  %v3383_v38 = vld [vmem:[#allocation3 + $0x104] sm:$0xf0]  ;;  %v3390_v57 = vor.u32 %v5337_v15, %v5335_v21 }
 0x2e2   : > { %v5348_v18 = vrot.slane %v1291_v22, 4  ;;  %1686 = vst [vmem:[#allocation3 + $0x1c] sm:$0xf] %v1678_v8  ;;  %v1535_v20 = vor.u32 %v1534_v17, %v1530_v16  ;;  %v3386_v52 = vor.u32 %v3778_v32, %v3383_v38  ;;  %v1047_v44 = vld [vmem:[#allocation2 + $0x24] sm:$0xf]  ;;  %v1592_v23 = vshrl.u32 %v4979_v37, 16 }
 0x2e3   : > { %v1531_v41 = vsel %vm4843_vm12, %v1526_v49, %v1530_v16  ;;  %v1150_v55 = vsel %vm4934_vm11, %v5106_v34, %v1149_v40  ;;  %v1208_v50 = vunpack.c.l.b16 %v1151_v26  ;;  %1687 = vst [vmem:[#allocation3 + $0x40] sm:$0xf] %v1679_v61  ;;  %v1457_v24 = vld [vmem:[#allocation2 + $0x2c] sm:$0xf]  ;;  %v1694_v54 = vld [vmem:[#allocation2 + $0x18] sm:$0xf]  ;;  %v1209_v39 = vunpack.c.h.b16 %v1151_v26 }
 0x2e4   : > { %2747 = vmatmul.bf16.gmra.mxu0 %v3354_v3  ;;  %1565 = vst [vmem:[#allocation3 + $0xc8] sm:$0xf] %v1531_v41  ;;  %v1048_v9 = vld [vmem:[#allocation2 + $0x28] sm:$0x1]  ;;  %v1201_v56 = vunpack.c.l.b16 %v1150_v55  ;;  %v1202_v28 = vunpack.c.h.b16 %v1150_v55  ;;  %v5357_v48 = vrot.slane %v1535_v20, 4  ;;  %2723 = vmatmul.bf16.gmra.mxu3 %v3386_v52  ;;  %v3850_v13 = vld [vmem:[#allocation9 + $0x200] sm:$0xff] }
 0x2e5   : > { %v1695_v12 = vld [vmem:[#allocation2 + $0x1c] sm:$0xf]  ;;  %vm1212_vm10 = vcmp.ne.s32.totalorder %v1208_v50, %v4835_v59  ;;  %v3262_v34 = vrot.slane %v5333_v2, 11  ;;  %v1595_v47 = vshll.u32 %v4979_v37, 16  ;;  %v1696_v16 = vld [vmem:[#allocation2 + $0x20] sm:$0xf]  ;;  %vm1213_vm5 = vcmp.ne.s32.totalorder %v1209_v39, %v4855_v10  ;;  %2852 = vmatpush.bf16.msra.mxu0 %v3850_v13 }
 0x2e6   : > { %v3345_v31 = vld [vmem:[#allocation3 + $0x98] sm:$0xf]  ;;  %vm1205_vm14 = vcmp.ne.s32.totalorder %v1201_v56, %v4835_v59  ;;  %vm1206_vm3 = vcmp.ne.s32.totalorder %v1202_v28, %v4855_v10  ;;  %v1458_v51 = vld [vmem:[#allocation2 + $0x30] sm:$0x1]  ;;  %v1601_v27 = vshrl.u32 %v5346_v29, 16  ;;  %v1594_v2 = vrot.slane %v1592_v23, 7  ;;  %vm5378_vm15 = vmpackc.low %vm1213_vm5, %vm1212_vm10 }
 0x2e7   : > { %v3770_v8 = vld [vmem:[#allocation3 + $0xa4] sm:$0xf]  ;;  %vm5367_vm6 = vmpackc.low %vm1206_vm3, %vm1205_vm14  ;;  %v1604_v3 = vshll.u32 %v5346_v29, 16  ;;  %v1703_v37 = vsel %vm5120_vm1, %v1694_v54, 0  ;;  %v1704_v22 = vsel %vm5147_vm9, %v1695_v12, 0  ;;  %v5390_v19 = vsel %vm5155_vm2, %v1696_v16, 0 }
 0x2e8   : > { %v3773_v61 = vld [vmem:[#allocation3 + $0xb8] sm:$0xf0]  ;;  %v1222_v58 = vsel %vm5367_vm6, %v1047_v44, 0  ;;  %v1466_v17 = vsel %vm5367_vm6, %v1457_v24, 0  ;;  %v5386_v32 = vrot.slane %v1601_v27, 7  ;;  %v1223_v59 = vsel %vm5378_vm15, %v1048_v9, 0 }
 0x2e9   : > { %v3346_v46 = vor.u32 %v3773_v61, %v3345_v31  ;;  %v1294_v49 = vshll.u32 %v1222_v58, 16  ;;  %v1298_v40 = vshrl.u32 %v1222_v58, 16  ;;  %v3753_v26 = vld [vmem:[#allocation3 + $0x1c] sm:$0xf]  ;;  %v1304_v29 = vshll.u32 %v1223_v59, 16 }
 0x2ea   : > { %v3291_v38 = vld [vmem:[#allocation3 + $0x3c] sm:$0xf0]  ;;  %v1467_v20 = vsel %vm5378_vm15, %v1458_v51, 0  ;;  %v1538_v52 = vshll.u32 %v1466_v17, 16  ;;  %v1542_v41 = vshrl.u32 %v1466_v17, 16  ;;  %v1597_v16 = vor.u32 %v1595_v47, %v1594_v2 }
 0x2eb   : > { %2689 = vmatmul.bf16.gmra.mxu2 %v3346_v46  ;;  %v3355_v44 = vld [vmem:[#allocation3 + $0xc4] sm:$0xf0]  ;;  %v1296_v36 = vrot.slane %v1294_v49, 5  ;;  %v1300_v55 = vrot.slane %v1298_v40, 4  ;;  %v3294_v50 = vor.u32 %v3753_v26, %v3291_v38  ;;  %v1548_v24 = vshll.u32 %v1467_v20, 16 }
 0x2ec   : > { %v3358_v54 = vor.u32 %v3770_v8, %v3355_v44  ;;  %v1306_v56 = vrot.slane %v1304_v29, 5  ;;  %v1540_v9 = vrot.slane %v1538_v52, 5  ;;  %v1544_v28 = vrot.slane %v1542_v41, 4  ;;  %v1680_v39 = vld [vmem:[#allocation2 + $0x20] sm:$0xf] }
 0x2ed   : > { %v1297_v12 = vsel %vm4843_vm12, %v5348_v18, %v1296_v36  ;;  %v1301_v13 = vor.u32 %v1300_v55, %v1296_v36  ;;  %v1550_v23 = vrot.slane %v1548_v24, 5  ;;  %1688 = vst [vmem:[#allocation3 + $0x64] sm:$0xf] %v1680_v39  ;;  %v1599_v27 = vrot.slane %v1594_v2, 4  ;;  %v1571_v61 = vld [vmem:[#allocation2 + $0x20] sm:$0xf] }
 0x2ee   : > { %2776 = vmatmul.bf16.gmra.mxu1 %v3358_v54  ;;  %1322 = vst [vmem:[#allocation3 + $0xe0] sm:$0xf] %v1297_v12  ;;  %v1541_v31 = vsel %vm4843_vm12, %v5357_v48, %v1540_v9  ;;  %v1545_v51 = vor.u32 %v1544_v28, %v1540_v9  ;;  %v1606_v8 = vor.u32 %v1604_v3, %v5386_v32  ;;  %v1713_v17 = vshrl.u32 %v1703_v37, 16  ;;  %v1681_v47 = vld [vmem:[#allocation2 + $0x24] sm:$0xf] }
 0x2ef   : > { %v1302_v58 = vrot.slane %v1301_v13, 4  ;;  %1566 = vst [vmem:[#allocation3 + $0xec] sm:$0xf] %v1541_v31  ;;  %v1598_v18 = vsel %vm4934_vm11, %v3262_v34, %v1597_v16  ;;  %v1716_v46 = vshll.u32 %v1703_v37, 16  ;;  %v1722_v40 = vshll.u32 %v1704_v22, 16 }
 0x2f0   : > { %v1546_v59 = vrot.slane %v1545_v51, 4  ;;  %v1607_v49 = vsel %vm4934_vm11, %v1599_v27, %v1606_v8  ;;  %1670 = vst [vmem:[#allocation3 + $0x18] sm:$0xf] %v1598_v18  ;;  %v1726_v48 = vshrl.u32 %v1704_v22, 16  ;;  %v1715_v3 = vrot.slane %v1713_v17, 4 }
 0x2f1   : > { %v1307_v2 = vsel %vm4843_vm12, %v1302_v58, %v1306_v56  ;;  %1671 = vst [vmem:[#allocation3 + $0x3c] sm:$0xf] %v1607_v49  ;;  %v1718_v26 = vrot.slane %v1716_v46, 5  ;;  %v1732_v29 = vshll.u32 %v5390_v19, 16  ;;  %v1724_v37 = vrot.slane %v1722_v40, 5 }
 0x2f2   : > { %1323 = vst [vmem:[#allocation3 + $0x104] sm:$0xf] %v1307_v2  ;;  %v1551_v34 = vsel %vm4843_vm12, %v1546_v59, %v1550_v23  ;;  %v1728_v38 = vrot.slane %v1726_v48, 4  ;;  %v1572_v20 = vld [vmem:[#allocation2 + $0x24] sm:$0xf]  ;;  %vm5706_vm2 = vnez %v5677_v11  ;;  %vm5707_vm1 = vnez %v5657_v43 }
 0x2f3   : > { %1567 = vst [vmem:[#allocation3 + $0x110] sm:$0xf] %v1551_v34  ;;  %v1719_v52 = vor.u32 %v1718_v26, %v1715_v3  ;;  %v1580_v22 = vsel %vm5706_vm2, %v1571_v61, 0  ;;  %v1581_v41 = vsel %vm5707_vm1, %v1572_v20, 0  ;;  %v1734_v36 = vrot.slane %v1732_v29, 5 }
 0x2f4   : > { %2752 = vmatmul.bf16.gmra.mxu0 %v3390_v57  ;;  %v1729_v44 = vor.u32 %v1728_v38, %v1724_v37  ;;  %1689 = vst [vmem:[#allocation3 + $0x88] sm:$0xf] %v1681_v47  ;;  %v1610_v55 = vshrl.u32 %v1580_v22, 16  ;;  %2824 = vmatmul.bf16.vlgmr.msra.gmra.mxu3 %v3294_v50  ;;  %v1613_v54 = vshll.u32 %v1580_v22, 16  ;;  %v1619_v56 = vshrl.u32 %v1581_v41, 16 }
 0x2f5   : > { %v1720_v24 = vrot.slane %v1719_v52, 4  ;;  %v1622_v9 = vshll.u32 %v1581_v41, 16  ;;  %v1608_v11 = vrot.slane %v5386_v32, 4  ;;  %v1697_v12 = vld [vmem:[#allocation2 + $0x24] sm:$0xf]  ;;  %v1736_v8 = vshrl.u32 %v5390_v19, 16 }
 0x2f6   : > { %v1730_v28 = vrot.slane %v1729_v44, 4  ;;  %v1612_v39 = vrot.slane %v1610_v55, 7  ;;  %v3381_v43 = vld [vmem:[#allocation3 + $0xe0] sm:$0xf]  ;;  %v5422_v21 = vrot.slane %v1619_v56, 7  ;;  %v1706_v57 = vsel %vm5220_vm4, %v1697_v12, 0 }
 0x2f7   : > { %v1725_v13 = vsel %vm4843_vm12, %v1720_v24, %v1724_v37  ;;  %v1698_v15 = vld [vmem:[#allocation2 + $0x28] sm:$0xf]  ;;  %v3779_v50 = vld [vmem:[#allocation3 + $0xec] sm:$0xf]  ;;  %v1742_v61 = vshll.u32 %v1706_v57, 16  ;;  %v1746_v17 = vshrl.u32 %v1706_v57, 16  ;;  %vm5708_vm4 = vnez %v5663_v62 }
 0x2f8   : > { %v1735_v23 = vsel %vm4843_vm12, %v1730_v28, %v1734_v36  ;;  %1804 = vst [vmem:[#allocation3 + $0x20] sm:$0xf] %v1725_v13  ;;  %v1615_v16 = vor.u32 %v1613_v54, %v1612_v39  ;;  %v1617_v31 = vrot.slane %v1612_v39, 4  ;;  %v1707_v32 = vsel %vm5230_vm13, %v1698_v15, 0  ;;  %v1573_v47 = vld [vmem:[#allocation2 + $0x28] sm:$0xf] }
 0x2f9   : > { %v3782_v51 = vld [vmem:[#allocation3 + $0x100] sm:$0xf0]  ;;  %1805 = vst [vmem:[#allocation3 + $0x44] sm:$0xf] %v1735_v23  ;;  %v1624_v27 = vor.u32 %v1622_v9, %v5422_v21  ;;  %v1752_v46 = vshll.u32 %v1707_v32, 16  ;;  %v1738_v40 = vrot.slane %v1736_v8, 4  ;;  %vm5709_vm13 = vnez %v5659_v53 }
 0x2fa   : > { %v3382_v58 = vor.u32 %v3782_v51, %v3381_v43  ;;  %v3391_v14 = vld [vmem:[#allocation3 + $0x10c] sm:$0xf0]  ;;  %v1616_v18 = vsel %vm4934_vm11, %v1608_v11, %v1615_v16  ;;  %v3762_v49 = vld [vmem:[#allocation3 + $0x64] sm:$0xf]  ;;  %v1744_v48 = vrot.slane %v1742_v61, 5  ;;  %v1748_v19 = vrot.slane %v1746_v17, 4 }
 0x2fb   : > { %v3394_v59 = vor.u32 %v3779_v50, %v3391_v14  ;;  %v1625_v35 = vsel %vm4934_vm11, %v1617_v31, %v1624_v27  ;;  %1672 = vst [vmem:[#allocation3 + $0x60] sm:$0xf] %v1616_v18  ;;  %v3327_v2 = vld [vmem:[#allocation3 + $0x84] sm:$0xf0]  ;;  %v1754_v3 = vrot.slane %v1752_v46, 5  ;;  %v1739_v26 = vor.u32 %v1738_v40, %v1734_v36 }
 0x2fc   : > { %2694 = vmatmul.bf16.gmra.mxu2 %v3382_v58  ;;  %1673 = vst [vmem:[#allocation3 + $0x84] sm:$0xf] %v1625_v35  ;;  %v1756_v29 = vshrl.u32 %v1707_v32, 16  ;;  %v1682_v34 = vld [vmem:[#allocation2 + $0x28] sm:$0xf]  ;;  %v1582_v38 = vsel %vm5708_vm4, %v1573_v47, 0  ;;  %v1749_v20 = vor.u32 %v1748_v19, %v1744_v48  ;;  %v3330_v55 = vor.u32 %v3762_v49, %v3327_v2 }
 0x2fd   : > { %v1683_v37 = vld [vmem:[#allocation2 + $0x2c] sm:$0xf]  ;;  %1690 = vst [vmem:[#allocation3 + $0xac] sm:$0xf] %v1682_v34  ;;  %v1628_v22 = vshrl.u32 %v1582_v38, 16  ;;  %v1631_v41 = vshll.u32 %v1582_v38, 16 }
 0x2fe   : > { %2781 = vmatmul.bf16.gmra.mxu1 %v3394_v59  ;;  %v1574_v52 = vld [vmem:[#allocation2 + $0x2c] sm:$0xf]  ;;  %v1740_v24 = vrot.slane %v1739_v26, 4  ;;  %1691 = vst [vmem:[#allocation3 + $0xd0] sm:$0xf] %v1683_v37  ;;  %v1750_v56 = vrot.slane %v1749_v20, 4 }
 0x2ff   : > { %v3297_v44 = vld [vmem:[#allocation3 + $0x20] sm:$0xf]  ;;  %v1583_v54 = vsel %vm5709_vm13, %v1574_v52, 0  ;;  %v1626_v9 = vrot.slane %v5422_v21, 4  ;;  %v1630_v28 = vrot.slane %v1628_v22, 7  ;;  %v1758_v15 = vrot.slane %v1756_v29, 4 }
 0x300   : > { %v3758_v36 = vld [vmem:[#allocation3 + $0x40] sm:$0xf0]  ;;  %v1637_v62 = vshrl.u32 %v1583_v54, 16  ;;  %v1745_v39 = vsel %vm4843_vm12, %v1740_v24, %v1744_v48  ;;  %v1640_v12 = vshll.u32 %v1583_v54, 16  ;;  %v1699_v43 = vld [vmem:[#allocation2 + $0x2c] sm:$0xf]  ;;  %v1755_v57 = vsel %vm4843_vm12, %v1750_v56, %v1754_v3 }
 0x301   : > { %v3298_v11 = vor.u32 %v3758_v36, %v3297_v44  ;;  %v1700_v13 = vld [vmem:[#allocation2 + $0x30] sm:$0xf]  ;;  %1806 = vst [vmem:[#allocation3 + $0x68] sm:$0xf] %v1745_v39  ;;  %v1633_v53 = vor.u32 %v1631_v41, %v1630_v28  ;;  %v1635_v50 = vrot.slane %v1630_v28, 4  ;;  %v1708_v21 = vsel %vm5292_vm8, %v1699_v43, 0 }
 0x302   : > { %v5445_v23 = vrot.slane %v1637_v62, 7  ;;  %1807 = vst [vmem:[#allocation3 + $0x8c] sm:$0xf] %v1755_v57  ;;  %v1709_v16 = vsel %vm5296_vm7, %v1700_v13, 0  ;;  %v1759_v31 = vor.u32 %v1758_v15, %v1754_v3  ;;  %v3289_v32 = vld [vmem:[#allocation3 + $0x18] sm:$0xf]  ;;  %vm5710_vm7 = vnez %v5673_v30 }
 0x303   : > { %v1634_v51 = vsel %vm4934_vm11, %v1626_v9, %v1633_v53  ;;  %v1762_v8 = vshll.u32 %v1708_v21, 16  ;;  %v3757_v61 = vld [vmem:[#allocation3 + $0x38] sm:$0xf0]  ;;  %v1766_v14 = vshrl.u32 %v1708_v21, 16  ;;  %v1772_v25 = vshll.u32 %v1709_v16, 16 }
 0x304   : > { %2853 = vmatmul.bf16.vlgmr.msra.gmra.mxu0 %v3298_v11  ;;  %v1642_v27 = vor.u32 %v1640_v12, %v5445_v23  ;;  %2829 = vmatmul.bf16.gmra.mxu3 %v3330_v55  ;;  %1674 = vst [vmem:[#allocation3 + $0xa8] sm:$0xf] %v1634_v51  ;;  %v1760_v58 = vrot.slane %v1759_v31, 4  ;;  %v3290_v46 = vor.u32 %v3757_v61, %v3289_v32  ;;  %v1575_v35 = vld [vmem:[#allocation2 + $0x30] sm:$0xf]  ;;  %v1776_v29 = vshrl.u32 %v1709_v16, 16 }
 0x305   : > { %v1764_v18 = vrot.slane %v1762_v8, 5  ;;  %v1768_v17 = vrot.slane %v1766_v14, 4  ;;  %v1774_v49 = vrot.slane %v1772_v25, 5  ;;  %v3771_v48 = vld [vmem:[#allocation3 + $0xac] sm:$0xf]  ;;  %v1584_v3 = vsel %vm5039_vm0, %v1575_v35, 0 }
 0x306   : > { %v1643_v45 = vsel %vm4934_vm11, %v1635_v50, %v1642_v27  ;;  %v3363_v2 = vld [vmem:[#allocation3 + $0xcc] sm:$0xf0]  ;;  %v1576_v19 = vld [vmem:[#allocation2 + $0x34] sm:$0xf]  ;;  %v1646_v52 = vshrl.u32 %v1584_v3, 16  ;;  %v1649_v41 = vshll.u32 %v1584_v3, 16 }
 0x307   : > { %1675 = vst [vmem:[#allocation3 + $0xcc] sm:$0xf] %v1643_v45  ;;  %v1765_v47 = vsel %vm4843_vm12, %v1760_v58, %v1764_v18  ;;  %v1769_v59 = vor.u32 %v1768_v17, %v1764_v18  ;;  %v1684_v34 = vld [vmem:[#allocation2 + $0x30] sm:$0xf]  ;;  %v1685_v37 = vld [vmem:[#allocation2 + $0x34] sm:$0xf]  ;;  %v3366_v36 = vor.u32 %v3771_v48, %v3363_v2 }
 0x308   : > { %1808 = vst [vmem:[#allocation3 + $0xb0] sm:$0xf] %v1765_v47  ;;  %v3333_v40 = vld [vmem:[#allocation3 + $0x68] sm:$0xf]  ;;  %v1585_v20 = vsel %vm5710_vm7, %v1576_v19, 0  ;;  %v1648_v60 = vrot.slane %v1646_v52, 7 }
 0x309   : > { %v1770_v26 = vrot.slane %v1769_v59, 4  ;;  %v3767_v38 = vld [vmem:[#allocation3 + $0x88] sm:$0xf0]  ;;  %1692 = vst [vmem:[#allocation3 + $0xf4] sm:$0xf] %v1684_v34  ;;  %v1655_v44 = vshrl.u32 %v1585_v20, 16 }
 0x30a   : > { %1693 = vst [vmem:[#allocation3 + $0x118] sm:$0xf] %v1685_v37  ;;  %v1658_v55 = vshll.u32 %v1585_v20, 16  ;;  %v1778_v24 = vrot.slane %v1776_v29, 4  ;;  %v3334_v54 = vor.u32 %v3767_v38, %v3333_v40  ;;  %v1644_v56 = vrot.slane %v5445_v23, 4 }
 0x30b   : > { %v1775_v22 = vsel %vm4843_vm12, %v1770_v26, %v1774_v49  ;;  %v1657_v9 = vrot.slane %v1655_v44, 7  ;;  %v1701_v28 = vld [vmem:[#allocation2 + $0x34] sm:$0xf]  ;;  %v1702_v62 = vld [vmem:[#allocation2 + $0x38] sm:$0x1]  ;;  %v1651_v30 = vor.u32 %v1649_v41, %v1648_v60  ;;  %v1653_v11 = vrot.slane %v1648_v60, 4 }
 0x30c   : > { %2795 = vmatmul.bf16.vlgmr.msra.gmra.mxu2 %v3290_v46  ;;  %1809 = vst [vmem:[#allocation3 + $0xd4] sm:$0xf] %v1775_v22  ;;  %v1710_v39 = vsel %vm5367_vm6, %v1701_v28, 0  ;;  %v1711_v12 = vsel %vm5378_vm15, %v1702_v62, 0  ;;  %v1779_v13 = vor.u32 %v1778_v24, %v1774_v49  ;;  %v3325_v31 = vld [vmem:[#allocation3 + $0x60] sm:$0xf] }
 0x30d   : > { %v1660_v43 = vor.u32 %v1658_v55, %v1657_v9  ;;  %v1782_v15 = vshll.u32 %v1710_v39, 16  ;;  %v1786_v57 = vshrl.u32 %v1710_v39, 16  ;;  %v1652_v53 = vsel %vm4934_vm11, %v1644_v56, %v1651_v30  ;;  %v3766_v10 = vld [vmem:[#allocation3 + $0x80] sm:$0xf0]  ;;  %v3361_v63 = vld [vmem:[#allocation3 + $0xa8] sm:$0xf] }
 0x30e   : > { %v1792_v50 = vshll.u32 %v1711_v12, 16  ;;  %1676 = vst [vmem:[#allocation3 + $0xf0] sm:$0xf] %v1652_v53  ;;  %v1780_v21 = vrot.slane %v1779_v13, 4  ;;  %v3326_v61 = vor.u32 %v3766_v10, %v3325_v31  ;;  %v5478_v18 = vperm.slane %v4654_v0, 0  ;;  %v3865_v30 = vld [vmem:[#allocation10 + $0x38] sm:$0xff] }
 0x30f   : > { %v1661_v23 = vsel %vm4934_vm11, %v1653_v11, %v1660_v43  ;;  %v1784_v16 = vrot.slane %v1782_v15, 5  ;;  %v1788_v42 = vrot.slane %v1786_v57, 4  ;;  %v3369_v14 = vld [vmem:[#allocation3 + $0xb0] sm:$0xf]  ;;  %v3775_v2 = vld [vmem:[#allocation3 + $0xc8] sm:$0xf0]  ;;  %2959 = vmatpush.bf16.msra.mxu1 %v3865_v30 }
 0x310   : > { %1677 = vst [vmem:[#allocation3 + $0x114] sm:$0xf] %v1661_v23  ;;  %v1794_v8 = vrot.slane %v1792_v50, 5  ;;  %v3780_v17 = vld [vmem:[#allocation3 + $0xf4] sm:$0xf]  ;;  %v3362_v0 = vor.u32 %v3775_v2, %v3361_v63 }
 0x311   : > { %v1785_v32 = vsel %vm4843_vm12, %v1780_v21, %v1784_v16  ;;  %v1789_v27 = vor.u32 %v1788_v42, %v1784_v16  ;;  %v3399_v46 = vld [vmem:[#allocation3 + $0x114] sm:$0xf0]  ;;  %v2651_v43 = vpop.f32.mrf.mxu1  ;;  %v3864_v57 = vld [vmem:[#allocation10 + $0x30] sm:$0xff] }
 0x312   : > { %1810 = vst [vmem:[#allocation3 + $0xf8] sm:$0xf] %v1785_v32  ;;  %v3402_v35 = vor.u32 %v3780_v17, %v3399_v46  ;;  %v3863_v32 = vld [vmem:[#allocation10 + $0x28] sm:$0xff]  ;;  %v3860_v63 = vld [vmem:[#allocation10 + $0x10] sm:$0xff] }
 0x313   : > { %v1790_v58 = vrot.slane %v1789_v27, 4  ;;  %v3776_v45 = vld [vmem:[#allocation3 + $0xd0] sm:$0xf0]  ;;  %2960 = vmatpush.bf16.msra.mxu1 %v3864_v57 }
 0x314   : > { %2858 = vmatmul.bf16.gmra.mxu0 %v3334_v54  ;;  %2834 = vmatmul.bf16.gmra.mxu3 %v3366_v36  ;;  %v2661_v51 = vpop.f32.mrf.mxu3  ;;  %v3370_v59 = vor.u32 %v3776_v45, %v3369_v14 }
 0x315   : > { %v1795_v33 = vsel %vm4843_vm12, %v1790_v58, %v1794_v8  ;;  %v3397_v41 = vld [vmem:[#allocation3 + $0xf0] sm:$0xf] }
 0x316   : > { %1811 = vst [vmem:[#allocation3 + $0x11c] sm:$0xf] %v1795_v33 }
 0x317   : > { %v3784_v44 = vld [vmem:[#allocation3 + $0x110] sm:$0xf0]  ;;  %2961 = vmatpush.bf16.msra.mxu1 %v3863_v32 }
 0x318   : > { %v3398_v54 = vor.u32 %v3784_v44, %v3397_v41 }
 0x319   : > { %v3405_v37 = vld [vmem:[#allocation3 + $0xf8] sm:$0xf]  ;;  %v2653_v42 = vpop.f32.mrf.mxu1 }
 0x31c   : > { %2800 = vmatmul.bf16.gmra.mxu2 %v3326_v61  ;;  %v2663_v25 = vpop.f32.mrf.mxu3  ;;  %v3862_v61 = vld [vmem:[#allocation10 + $0x20] sm:$0xff] }
 0x31d   : > { %v3785_v38 = vld [vmem:[#allocation3 + $0x118] sm:$0xf0]  ;;  %2962 = vmatpush.bf16.msra.mxu1 %v3862_v61 }
 0x31e   : > { %v2622_v47 = vpop.f32.mrf.mxu0  ;;  %v3406_v52 = vor.u32 %v3785_v38, %v3405_v37 }
 0x31f   : > { %v2632_v49 = vpop.f32.mrf.mxu2  ;;  %v2623_v12 = vadd.f32 %v2622_v47, %v5478_v18 }
 0x320   : > { %v2633_v40 = vadd.f32 %v2632_v49, %v5478_v18 }
 0x321   : > { %v2652_v15 = vadd.f32 %v2651_v43, %v2623_v12  ;;  %v2656_v58 = vpop.f32.mrf.mxu1 }
 0x322   : > { %v5481_v48 = vadd.f32 %v2661_v51, %v2633_v40 }
 0x324   : > { %2863 = vmatmul.bf16.gmra.mxu0 %v3370_v59  ;;  %2839 = vmatmul.bf16.gmra.mxu3 %v3402_v35  ;;  %v2666_v19 = vpop.f32.mrf.mxu3  ;;  %v3861_v59 = vld [vmem:[#allocation10 + $0x18] sm:$0xff] }
 0x325   : > { %2963 = vmatpush.bf16.msra.mxu1 %v3861_v59 }
 0x326   : > { %v5483_v3 = vpop.f32.mrf.mxu0 }
 0x327   : > { %v2634_v26 = vpop.f32.mrf.mxu2 }
 0x328   : > { %v2635_v29 = vadd.f32 %v2634_v26, %v5478_v18 }
 0x329   : > { %2964 = vmatpush.bf16.msra.mxu1 %v3860_v63  ;;  %v2658_v38 = vpop.f32.mrf.mxu1 }
 0x32a   : > { %v5486_v34 = vadd.f32 %v2663_v25, %v2635_v29 }
 0x32c   : > { %2805 = vmatmul.bf16.gmra.mxu2 %v3362_v0  ;;  %v2668_v20 = vpop.f32.mrf.mxu3 }
 0x331   : > { %v2627_v22 = vpop.f32.mrf.mxu0 }
 0x332   : > { %v2628_v27 = vadd.f32 %v2627_v22, %v5478_v18 }
 0x334   : > { %2868 = vmatmul.bf16.gmra.mxu0 %v3406_v52  ;;  %v2637_v55 = vpop.f32.mrf.mxu2  ;;  %v2709_v24 = vpop.f32.mrf.mxu3  ;;  %v2657_v14 = vadd.f32 %v2656_v58, %v2628_v27  ;;  %v3859_v52 = vld [vmem:[#allocation10 + $0x8] sm:$0xff] }
 0x335   : > { %v2638_v60 = vadd.f32 %v2637_v55, %v5478_v18  ;;  %2965 = vmatpush.bf16.msra.mxu1 %v3859_v52  ;;  %v3858_v55 = vld [vmem:[#allocation10] sm:$0xff] }
 0x337   : > { %v2667_v36 = vadd.f32 %v2666_v19, %v2638_v60 }
 0x339   : > { %v5489_v56 = vpop.f32.mrf.mxu0  ;;  %2966 = vmatpush.bf16.msra.mxu1 %v3858_v55 }
 0x33c   : > { %2810 = vmatmul.bf16.gmra.mxu2 %v3398_v54  ;;  %v2639_v9 = vpop.f32.mrf.mxu2  ;;  %v5492_v62 = vpop.f32.mrf.mxu3 }
 0x33d   : > { %v2640_v28 = vadd.f32 %v2639_v9, %v5478_v18  ;;  %v2625_v9 = vadd.f32 %v5483_v3, %v5478_v18  ;;  %v2630_v3 = vadd.f32 %v5489_v56, %v5478_v18 }
 0x33f   : > { %v5494_v11 = vadd.f32 %v2668_v20, %v2640_v28  ;;  %v2654_v43 = vadd.f32 %v2653_v42, %v2625_v9 }
 0x341   : > { %v2738_v39 = vpop.f32.mrf.mxu0 }
 0x344   : > { %v2714_v13 = vpop.f32.mrf.mxu3 }
 0x346   : > { %v2767_v44 = vpop.f32.mrf.mxu1 }
 0x349   : > { %v2680_v53 = vpop.f32.mrf.mxu2  ;;  %v2740_v50 = vpop.f32.mrf.mxu0 }
 0x34a   : > { %v2681_v23 = vadd.f32 %v2680_v53, %v2652_v15 }
 0x34c   : > { %v2710_v21 = vadd.f32 %v2709_v24, %v2681_v23  ;;  %v5497_v10 = vpop.f32.mrf.mxu3 }
 0x34e   : > { %v2739_v16 = vadd.f32 %v2738_v39, %v2710_v21  ;;  %v2769_v39 = vpop.f32.mrf.mxu1 }
 0x350   : > { %v2768_v21 = vadd.f32 %v2767_v44, %v2739_v16 }
 0x351   : > { %v2743_v31 = vpop.f32.mrf.mxu0  ;;  %v2682_v51 = vpop.f32.mrf.mxu2 }
 0x354   : > { %v2719_v33 = vpop.f32.mrf.mxu3 }
 0x359   : > { %v5500_v8 = vpop.f32.mrf.mxu0 }
 0x35c   : > { %v5502_v35 = vpop.f32.mrf.mxu3 }
 0x35d   : > { %v2685_v45 = vpop.f32.mrf.mxu2 }
 0x35e   : > { %v2686_v25 = vadd.f32 %v2685_v45, %v2657_v14  ;;  %v2659_v14 = vadd.f32 %v2658_v38, %v2630_v3 }
 0x360   : > { %v2715_v17 = vadd.f32 %v2714_v13, %v2686_v25  ;;  %v2683_v13 = vadd.f32 %v2682_v51, %v2654_v43 }
 0x361   : > { %v2748_v46 = vpop.f32.mrf.mxu0 }
 0x362   : > { %v2744_v47 = vadd.f32 %v2743_v31, %v2715_v17  ;;  %v2712_v57 = vadd.f32 %v5492_v62, %v2683_v13 }
 0x364   : > { %v2741_v31 = vadd.f32 %v2740_v50, %v2712_v57 }
 0x365   : > { %v2687_v49 = vpop.f32.mrf.mxu2 }
 0x366   : > { %v2770_v27 = vadd.f32 %v2769_v39, %v2741_v31  ;;  %v2688_v51 = vadd.f32 %v2687_v49, %v2659_v14 }
 0x367   : > { %v2724_v0 = vpop.f32.mrf.mxu3 }
 0x368   : > { %v2717_v16 = vadd.f32 %v5497_v10, %v2688_v51 }
 0x369   : > { %v5504_v40 = vpop.f32.mrf.mxu0 }
 0x36a   : > { %v2746_v56 = vadd.f32 %v5500_v8, %v2717_v16 }
 0x36e   : > { %v2690_v2 = vpop.f32.mrf.mxu2 }
 0x36f   : > { %v2691_v19 = vadd.f32 %v2690_v2, %v5481_v48  ;;  %v5509_v22 = vpop.f32.mrf.mxu3 }
 0x371   : > { %v2720_v26 = vadd.f32 %v2719_v33, %v2691_v19  ;;  %v2753_v29 = vpop.f32.mrf.mxu0 }
 0x373   : > { %v5507_v37 = vadd.f32 %v2748_v46, %v2720_v26 }
 0x376   : > { %v2692_v20 = vpop.f32.mrf.mxu2 }
 0x377   : > { %v2825_v48 = vpop.f32.mrf.mxu3  ;;  %v2693_v55 = vadd.f32 %v2692_v20, %v5486_v34 }
 0x379   : > { %v5511_v41 = vpop.f32.mrf.mxu0 }
 0x37f   : > { %v2695_v60 = vpop.f32.mrf.mxu2  ;;  %v2827_v15 = vpop.f32.mrf.mxu3 }
 0x380   : > { %v2696_v24 = vadd.f32 %v2695_v60, %v2667_v36  ;;  %v2772_v36 = vpop.f32.mrf.mxu1 }
 0x381   : > { %v2854_v30 = vpop.f32.mrf.mxu0  ;;  %v2773_v2 = vadd.f32 %v2772_v36, %v2744_v47  ;;  %v2722_v47 = vadd.f32 %v5502_v35, %v2693_v55 }
 0x382   : > { %v2725_v54 = vadd.f32 %v2724_v0, %v2696_v24 }
 0x384   : > { %v5515_v28 = vadd.f32 %v2753_v29, %v2725_v54 }
 0x387   : > { %v5517_v12 = vpop.f32.mrf.mxu2  ;;  %v2830_v33 = vpop.f32.mrf.mxu3 }
 0x388   : > { %v2774_v62 = vpop.f32.mrf.mxu1  ;;  %v2698_v35 = vadd.f32 %v5517_v12, %v5494_v11 }
 0x389   : > { %v2856_v23 = vpop.f32.mrf.mxu0  ;;  %v2775_v38 = vadd.f32 %v2774_v62, %v2746_v56  ;;  %v2902_v56 = vunpack.c.l.bf16 %v4670_v4 }
 0x38f   : > { %v2796_v53 = vpop.f32.mrf.mxu2  ;;  %v2832_v18 = vpop.f32.mrf.mxu3 }
 0x390   : > { %v2797_v32 = vadd.f32 %v2796_v53, %v2768_v21  ;;  %v2777_v29 = vpop.f32.mrf.mxu1 }
 0x391   : > { %v2859_v42 = vpop.f32.mrf.mxu0  ;;  %v2778_v43 = vadd.f32 %v2777_v29, %v5507_v37  ;;  %v2727_v37 = vadd.f32 %v5509_v22, %v2698_v35  ;;  %v2908_v35 = vunpack.c.l.bf16 %v4679_v7 }
 0x392   : > { %v2826_v61 = vadd.f32 %v2825_v48, %v2797_v32 }
 0x393   : > { %v2756_v51 = vadd.f32 %v5511_v41, %v2727_v37  ;;  %v2910_v41 = vperm.slane %v4656_v1, 0  ;;  %v2905_v1 = vunpack.c.h.bf16 %v4673_v5 }
 0x394   : > { %v2855_v25 = vadd.f32 %v2854_v30, %v2826_v61 }
 0x396   : > { %v2874_v59 = vmax.f32 %v2855_v25, 0.0 }
 0x397   : > { %v2798_v58 = vpop.f32.mrf.mxu2  ;;  %v2835_v24 = vpop.f32.mrf.mxu3 }
 0x398   : > { %v2799_v45 = vadd.f32 %v2798_v58, %v2770_v27  ;;  %v2779_v8 = vpop.f32.mrf.mxu1 }
 0x399   : > { %v2861_v26 = vpop.f32.mrf.mxu0 }
 0x39a   : > { %v2828_v17 = vadd.f32 %v2827_v15, %v2799_v45  ;;  %v2751_v15 = vadd.f32 %v5504_v40, %v2722_v47 }
 0x39c   : > { %v2857_v46 = vadd.f32 %v2856_v23, %v2828_v17  ;;  %v2780_v34 = vadd.f32 %v2779_v8, %v2751_v15 }
 0x39e   : > { %v2875_v50 = vmax.f32 %v2857_v46, 0.0 }
 0x39f   : > { %v2801_v63 = vpop.f32.mrf.mxu2  ;;  %v2837_v53 = vpop.f32.mrf.mxu3 }
 0x3a0   : > { %v2882_v19 = vpack.c.bf16 %v2875_v50, %v2874_v59  ;;  %v2802_v0 = vadd.f32 %v2801_v63, %v2773_v2  ;;  %v2782_v31 = vpop.f32.mrf.mxu1 }
 0x3a1   : > { %v2864_v48 = vpop.f32.mrf.mxu0  ;;  %v2783_v14 = vadd.f32 %v2782_v31, %v5515_v28 }
 0x3a2   : > { %2967 = vmatmul.bf16.vlgmr.msra.gmra.mxu1 %v2882_v19  ;;  %v2831_v49 = vadd.f32 %v2830_v33, %v2802_v0 }
 0x3a4   : > { %v2860_v10 = vadd.f32 %v2859_v42, %v2831_v49 }
 0x3a6   : > { %v2876_v9 = vmax.f32 %v2860_v10, 0.0 }
 0x3a7   : > { %v2803_v52 = vpop.f32.mrf.mxu2  ;;  %v2840_v40 = vpop.f32.mrf.mxu3 }
 0x3a8   : > { %v2804_v44 = vadd.f32 %v2803_v52, %v2775_v38  ;;  %v2784_v17 = vpop.f32.mrf.mxu1 }
 0x3a9   : > { %v2866_v23 = vpop.f32.mrf.mxu0  ;;  %v2785_v62 = vadd.f32 %v2784_v17, %v2756_v51 }
 0x3aa   : > { %v2833_v60 = vadd.f32 %v2832_v18, %v2804_v44 }
 0x3ac   : > { %v2862_v54 = vadd.f32 %v2861_v26, %v2833_v60  ;;  %v2903_v26 = vunpack.c.h.bf16 %v4670_v4 }
 0x3ae   : > { %v2877_v30 = vmax.f32 %v2862_v54, 0.0 }
 0x3af   : > { %v2806_v39 = vpop.f32.mrf.mxu2  ;;  %v2842_v16 = vpop.f32.mrf.mxu3 }
 0x3b0   : > { %v2883_v13 = vpack.c.bf16 %v2877_v30, %v2876_v9  ;;  %v2807_v57 = vadd.f32 %v2806_v39, %v2778_v43 }
 0x3b1   : > { %v2869_v42 = vpop.f32.mrf.mxu0 }
 0x3b2   : > { %2972 = vmatmul.bf16.gmra.mxu1 %v2883_v13  ;;  %v2836_v20 = vadd.f32 %v2835_v24, %v2807_v57  ;;  %v2904_v24 = vunpack.c.l.bf16 %v4673_v5  ;;  %v2906_v13 = vunpack.c.l.bf16 %v4676_v6  ;;  %v2907_v57 = vunpack.c.h.bf16 %v4676_v6 }
 0x3b3   : > { %v2909_v6 = vunpack.c.h.bf16 %v4679_v7 }
 0x3b4   : > { %v2865_v3 = vadd.f32 %v2864_v48, %v2836_v20 }
 0x3b6   : > { %v2878_v61 = vmax.f32 %v2865_v3, 0.0 }
 0x3b7   : > { %v2808_v21 = vpop.f32.mrf.mxu2 }
 0x3b8   : > { %v2809_v36 = vadd.f32 %v2808_v21, %v2780_v34 }
 0x3b9   : > { %v2871_v50 = vpop.f32.mrf.mxu0 }
 0x3ba   : > { %v2838_v32 = vadd.f32 %v2837_v53, %v2809_v36 }
 0x3bc   : > { %v2867_v27 = vadd.f32 %v2866_v23, %v2838_v32 }
 0x3be   : > { %v2879_v58 = vmax.f32 %v2867_v27, 0.0 }
 0x3bf   : > { %v2811_v33 = vpop.f32.mrf.mxu2 }
 0x3c0   : > { %v2884_v45 = vpack.c.bf16 %v2879_v58, %v2878_v61  ;;  %v2812_v25 = vadd.f32 %v2811_v33, %v2783_v14 }
 0x3c2   : > { %2977 = vmatmul.bf16.gmra.mxu1 %v2884_v45  ;;  %v2841_v11 = vadd.f32 %v2840_v40, %v2812_v25 }
 0x3c4   : > { %v2870_v22 = vadd.f32 %v2869_v42, %v2841_v11 }
 0x3c6   : > { %v2880_v2 = vmax.f32 %v2870_v22, 0.0 }
 0x3c7   : > { %v2813_v12 = vpop.f32.mrf.mxu2 }
 0x3c8   : > { %v2814_v46 = vadd.f32 %v2813_v12, %v2785_v62 }
 0x3ca   : > { %v2843_v59 = vadd.f32 %v2842_v16, %v2814_v46 }
 0x3cc   : > { %v2872_v63 = vadd.f32 %v2871_v50, %v2843_v59 }
 0x3ce   : > { %v2881_v19 = vmax.f32 %v2872_v63, 0.0 }
 0x3d0   : > { %v2885_v28 = vpack.c.bf16 %v2881_v19, %v2880_v2 }
 0x3d2   : > { %2982 = vmatmul.bf16.gmra.mxu1 %v2885_v28 }
 0x41f   : > { %v2968_v18 = vpop.f32.mrf.mxu1 }
 0x420   : > { %v2969_v0 = vadd.f32 %v2968_v18, %v2910_v41 }
 0x422   : > { %v2988_v38 = vadd.f32 %v2969_v0, %v2902_v56 }
 0x424   : > { %v2996_v44 = vmax.f32 %v2988_v38, 0.0 }
 0x427   : > { %v2970_v29 = vpop.f32.mrf.mxu1 }
 0x428   : > { %v2971_v49 = vadd.f32 %v2970_v29, %v2910_v41 }
 0x42a   : > { %v2989_v52 = vadd.f32 %v2971_v49, %v2903_v26 }
 0x42c   : > { %v2997_v55 = vmax.f32 %v2989_v52, 0.0 }
 0x42e   : > { %v3909_v60 = vpack.c.bf16 %v2997_v55, %v2996_v44 }
 0x42f   : > { %v2973_v10 = vpop.f32.mrf.mxu1 }
 0x430   : > { %3910 = vst [vmem:[%s4736_s13] sm:$0xff] %v3909_v60   ;;  %v2974_v54 = vadd.f32 %v2973_v10, %v2910_v41 }
 0x432   : > { %v2990_v47 = vadd.f32 %v2974_v54, %v2904_v24 }
 0x434   : > { %v2998_v4 = vmax.f32 %v2990_v47, 0.0 }
 0x437   : > { %v2975_v48 = vpop.f32.mrf.mxu1 }
 0x438   : > { %v2976_v9 = vadd.f32 %v2975_v48, %v2910_v41 }
 0x43a   : > { %v2991_v30 = vadd.f32 %v2976_v9, %v2905_v1 }
 0x43c   : > { %v2999_v8 = vmax.f32 %v2991_v30, 0.0 }
 0x43e   : > { %v3914_v39 = vpack.c.bf16 %v2999_v8, %v2998_v4 }
 0x43f   : > { %v2978_v43 = vpop.f32.mrf.mxu1 }
 0x440   : > { %3933 = vst [vmem:[%s4736_s13 + $0x8] sm:$0xff] %v3914_v39   ;;  %v2979_v15 = vadd.f32 %v2978_v43, %v2910_v41 }
 0x442   : > { %v2992_v34 = vadd.f32 %v2979_v15, %v2906_v13 }
 0x444   : > { %v3000_v23 = vmax.f32 %v2992_v34, 0.0 }
 0x447   : > { %v2980_v53 = vpop.f32.mrf.mxu1 }
 0x448   : > { %v2981_v5 = vadd.f32 %v2980_v53, %v2910_v41 }
 0x44a   : > { %v2993_v20 = vadd.f32 %v2981_v5, %v2907_v57 }
 0x44c   : > { %v3001_v21 = vmax.f32 %v2993_v20, 0.0 }
 0x44e   : > { %v3919_v36 = vpack.c.bf16 %v3001_v21, %v3000_v23 }
 0x44f   : > { %v2983_v31 = vpop.f32.mrf.mxu1 }
 0x450   : > { %3934 = vst [vmem:[%s4736_s13 + $0x10] sm:$0xff] %v3919_v36   ;;  %v2984_v32 = vadd.f32 %v2983_v31, %v2910_v41 }
 0x452   : > { %v2994_v27 = vadd.f32 %v2984_v32, %v2908_v35 }
 0x454   : > { %v3002_v58 = vmax.f32 %v2994_v27, 0.0 }
 0x457   : > { %v2985_v3 = vpop.f32.mrf.mxu1 }
 0x458   : > { %v2986_v37 = vadd.f32 %v2985_v3, %v2910_v41 }
 0x45a   : > { %v2995_v61 = vadd.f32 %v2986_v37, %v2909_v6 }
 0x45c   : > { %v3003_v40 = vmax.f32 %v2995_v61, 0.0 }
 0x45e   : > { %v3924_v33 = vpack.c.bf16 %v3003_v40, %v3002_v58 }
 0x460   : > { %3935 = vst [vmem:[%s4736_s13 + $0x18] sm:$0xff] %v3924_v33  }
 0x461   : > { %4321 = shalt.err (!%p4318_p12)
}
 0x462   : > { %s4436_s18 = smov 64   ;;  %s4437_s13 = smov 4  }
 0x463   : > { %4010 = dma.vmem_to_hbm [thread:$0]  (%p4538_p6), %s3036_s24, 512, %s3038_s25, %s3021_s6, %s4436_s18, %s4436_s18, %s4437_s13  }
 0x464 PF: > { %s5712_s14 = sld [smem:[#allocation18_spill]]  ;;  %p4042_p13 = scmp.ge.s32.totalorder %s4424_s28, 2 }
 0x466   : > { %p4030_p1 = pnand %p4042_p13, %p4544_p10 }
 0x468   : > { %p4031_p4 = pneg %p4030_p1 }
 0x46a   : > { %s3052_s4 = sand.u32 1, %s5712_s14  }
 0x46b   : > { %s3053_s17 = scalar_lea.sflag [#allocation6], %s3052_s4 }
 0x46c   : > { %4379 = dma.done.wait (%p4031_p4), %s3053_s17, 512  }
 0x46d   : > { %4381 = vsyncadd (%p4031_p4), %s3053_s17, 4294966784  ;;  %s23_s28 = sadd.s32 1, %s4424_s28   ;;  %s5714_s24 = sld [smem:[#allocation19_spill]] }
 0x46e   : > { %p20_p11 = scmp.ge.s32.totalorder %s23_s28, 10   ;;  %s5715_s26 = sld [smem:[#allocation22_spill]] }
 0x46f   : > { %s5716_s30 = sld [smem:[#allocation23_spill]]  ;;  %s5717_s18 = smov %s4388_s19 }
 0x470   : > { %s5718_s19 = smov %s4392_s20  ;;  %s5719_s20 = smov %s4616_s2 }
 0x471   : > { %s5720_s21 = smov %s4400_s22  ;;  %s5721_s22 = smov %s4404_s23 }
 0x472   : > { %s5722_s23 = smov %s4613_s11  ;;  %s5723_s25 = smov %s4420_s27 }
 0x473   :  { %22 = sbr.rel (!%p20_p11) target bundleno = 16 (0x10), region = 120 }
 0x475   : > { %s5724_s27 = smov %s5716_s30 }
 0x478   :  { %3059 = vsyncpa [#allocation5], 1 }
 0x479   :  { %3061 = vsyncpa [#allocation5 + $0x1], 1 }
 0x47a   :  { %3062 = vsyncpa [#allocation8], 1 }
 0x47b   :  { %3063 = vsyncpa [#allocation11], 1 }
 0x47c   :  { %3064 = vsyncpa [#allocation6], 1 }
 0x47d   :  { %3066 = vsyncpa [#allocation6 + $0x1], 1 }

</bundles_post_ra>
